<compile_context>
chip_gen: v7x
topology: tpu7x:2x2x1
jax: 0.10.0
libtpu: 0.0.40
codegen_flags: <defaults>
</compile_context>

<pallas_src>
import math
import functools

import jax
import jax.numpy as jnp
from jax import lax
from jax.experimental import pallas as pl
from jax.experimental.pallas import tpu as pltpu

EPS = 1e-5


def _layernorm(x, gamma, beta):
    """fp32 LayerNorm; gamma/beta are (1, H) and broadcast over rows."""
    mu = jnp.mean(x, axis=-1, keepdims=True)
    var = jnp.mean((x - mu) ** 2, axis=-1, keepdims=True)
    return (x - mu) * lax.rsqrt(var + EPS) * gamma + beta


def multi_block_kernel(x_ref,
                       g1_ref, bt1_ref,
                       wqkv_ref, bqkv_ref,
                       wo_ref, bo_ref,
                       g2_ref, bt2_ref,
                       w1_ref, b1_ref,
                       w2_ref, b2_ref,
                       o_ref,
                       *, ck, unroll_limit=4):
    """One BlockWrapper layer for one (Bb, T, H) batch block.

    grid = (B//Bb, L); the output block index is constant across L so o_ref
    stays resident in VMEM and carries the activation between layers.
    """
    layer = pl.program_id(1)

    # Layer 0: seed the resident activation with the input block.
    # (The src block index is constant across L, so its DMA happens only once
    # per batch block even though it is an input for every layer.)
    @pl.when(layer == 0)
    def _():
        o_ref[...] = x_ref[...]

    Bb, T, H = o_ref.shape
    rows = Bb * T
    n_chunks = T // ck
    inv_sqrt_h = 1.0 / math.sqrt(H)

    # Fold batch into the matmul M dimension for all projections / FFN.
    x = o_ref[...].astype(jnp.float32).reshape(rows, H)

    # ---- norm1 (fp32) ----
    xn = _layernorm(x, g1_ref[...], bt1_ref[...])

    # ---- fused QKV projection: bf16 MXU operands, fp32 accumulation ----
    qkv = jnp.dot(xn.astype(jnp.bfloat16), wqkv_ref[...],
                  preferred_element_type=jnp.float32) + bqkv_ref[...]
    # Fold 1/sqrt(H) into q before QK^T (moves the scale from TxT down to TxH).
    q = (qkv[:, 0 * H:1 * H] * inv_sqrt_h).astype(jnp.bfloat16).reshape(Bb, T, H)
    k = qkv[:, 1 * H:2 * H].astype(jnp.bfloat16).reshape(Bb, T, H)
    v = qkv[:, 2 * H:3 * H].astype(jnp.bfloat16).reshape(Bb, T, H)

    # ---- causal single-head attention: flash-style online softmax ----
    # q and kv are tiled into equal ck-sized chunks; q-chunk qi only visits
    # kv-chunks 0..qi (fully masked chunks are skipped entirely) and only the
    # diagonal chunk needs masking.  The diagonal mask and its iotas are
    # hoisted out of the chunk loops (JAX does not CSE broadcast_in_dim).
    neg_inf = jnp.float32(-1e30)
    row_l = lax.broadcasted_iota(jnp.int32, (ck, ck), 0)
    col_l = lax.broadcasted_iota(jnp.int32, (ck, ck), 1)
    diag_mask = (col_l <= row_l)[None, :, :]            # (1, ck, ck)

    def attend(q_c, k_c, v_c, carry, mask=None):
        m, lsum, acc = carry
        s = jnp.einsum('bqd,bkd->bqk', q_c, k_c,
                       preferred_element_type=jnp.float32)     # (Bb, ck, ck)
        if mask is not None:
            s = jnp.where(mask, s, neg_inf)
        m_new = jnp.maximum(m, jnp.max(s, axis=-1, keepdims=True))
        alpha = jnp.exp(m - m_new)
        p = jnp.exp(s - m_new)
        lsum = alpha * lsum + jnp.sum(p, axis=-1, keepdims=True)
        acc = alpha * acc + jnp.einsum('bqk,bkd->bqd', p.astype(jnp.bfloat16),
                                       v_c, preferred_element_type=jnp.float32)
        return m_new, lsum, acc

    out_chunks = []
    for qi in range(n_chunks):                          # static q-chunk loop
        q_c = q[:, qi * ck:(qi + 1) * ck, :]
        carry = (jnp.full((Bb, ck, 1), neg_inf, jnp.float32),
                 jnp.zeros((Bb, ck, 1), jnp.float32),
                 jnp.zeros((Bb, ck, H), jnp.float32))
        if qi > 0:
            if n_chunks <= unroll_limit:
                # Short trip count: keep unrolled with static slices.
                for c in range(qi):
                    carry = attend(q_c,
                                   k[:, c * ck:(c + 1) * ck, :],
                                   v[:, c * ck:(c + 1) * ck, :],
                                   carry)
            else:
                # Long trip count: fori_loop bounds live ranges (no vreg-spill
                # blowup from a huge unrolled loop).
                def body(c, carry):
                    k_c = lax.dynamic_slice_in_dim(k, c * ck, ck, axis=1)
                    v_c = lax.dynamic_slice_in_dim(v, c * ck, ck, axis=1)
                    return attend(q_c, k_c, v_c, carry)
                carry = lax.fori_loop(0, qi, body, carry)
        # Diagonal chunk: the only one that needs the causal mask.
        _, lsum, acc = attend(q_c,
                              k[:, qi * ck:(qi + 1) * ck, :],
                              v[:, qi * ck:(qi + 1) * ck, :],
                              carry, mask=diag_mask)
        out_chunks.append(acc * pl.reciprocal(lsum, approx=True))   # EUP divide

    attn = out_chunks[0] if n_chunks == 1 else jnp.concatenate(out_chunks, axis=1)
    attn = attn.reshape(rows, H)

    # ---- output projection + residual 1 ----
    attn = jnp.dot(attn.astype(jnp.bfloat16), wo_ref[...],
                   preferred_element_type=jnp.float32) + bo_ref[...]
    h = attn + x

    # ---- norm2 + feed-forward (dropout == identity in eval mode) ----
    hn = _layernorm(h, g2_ref[...], bt2_ref[...])
    f = jnp.dot(hn.astype(jnp.bfloat16), w1_ref[...],
                preferred_element_type=jnp.float32) + b1_ref[...]
    # tanh GELU goes through the EUP slot; nn.GELU() default is exact erf,
    # numerical delta is small.
    f = jax.nn.gelu(f, approximate=True)
    f = jnp.dot(f.astype(jnp.bfloat16), w2_ref[...],
                preferred_element_type=jnp.float32) + b2_ref[...]

    # ---- residual 2: write back into the resident activation ----
    # (could optionally be carried in bf16 to halve the resident footprint;
    # kept in src.dtype for parity with the PyTorch fp32 reference)
    o_ref[...] = (h + f).reshape(Bb, T, H).astype(o_ref.dtype)


def _pick_batch_block(B, T, target_rows=256):
    """Largest divisor Bb of B with Bb*T <= ~target_rows (amortizes per-layer
    weight DMA over the batch and grows the MXU M dim); when B >= 4 keep at
    least 2 grid steps on the parallel batch axis so both v7x cores are used."""
    limit = max(1, min(B, max(1, target_rows // max(T, 1))))
    if B >= 4:
        limit = min(limit, B // 2)
    best = 1
    for bb in range(1, limit + 1):
        if B % bb == 0:
            best = bb
    return best


def _pick_kv_chunk(T):
    """Attention chunk size: prefer lane-dense multiples of 128 that divide T,
    else the largest divisor of T in [64, 512], else a single chunk."""
    for c in (512, 384, 256, 128):
        if T % c == 0:
            return c
    for d in range(min(T, 512), 63, -1):
        if T % d == 0:
            return d
    # TODO(synk): pad T to a multiple of 128 for truly arbitrary long sequences.
    return T


def multi_blocks_forward(src, stacked, need_cache=False):
    """MultiBlocks.forward: all L BlockWrapper layers fused in one pallas_call.

    src: (B, T, H) fp32.  `stacked` holds per-layer params stacked on axis 0.
    """
    B, T, H = src.shape
    L = stacked["wqkv"].shape[0]
    F = stacked["w1"].shape[-1]

    Bb = _pick_batch_block(B, T)        # batch rows folded per grid step
    ck = _pick_kv_chunk(T)              # q/kv chunk size for the flash loop

    def lspec(shape):
        # Per-layer weight slab: leading L dim squeezed, index follows layer.
        nz = (0,) * len(shape)
        return pl.BlockSpec((None,) + shape, lambda b, l, _nz=nz: (l,) + _nz)

    in_specs = [
        pl.BlockSpec((Bb, T, H), lambda b, l: (b, 0, 0)),     # src block
        lspec((1, H)), lspec((1, H)),                         # norm1 gamma/beta
        lspec((H, 3 * H)), lspec((1, 3 * H)),                 # wqkv, bqkv
        lspec((H, H)), lspec((1, H)),                         # wo, bo
        lspec((1, H)), lspec((1, H)),                         # norm2 gamma/beta
        lspec((H, F)), lspec((1, F)),                         # linear1 w, b
        lspec((F, H)), lspec((1, H)),                         # linear2 w, b
    ]
    out_spec = pl.BlockSpec((Bb, T, H), lambda b, l: (b, 0, 0))

    args = (src,
            stacked["g1"], stacked["bta1"],
            stacked["wqkv"], stacked["bqkv"],
            stacked["wo"], stacked["bo"],
            stacked["g2"], stacked["bta2"],
            stacked["w1"], stacked["b1"],
            stacked["w2"], stacked["b2"])

    # VMEM budget from the actual footprint: double-buffered per-layer weight
    # slabs, double-buffered src/out activation blocks, plus the fp32/bf16
    # temporaries live in the body (x, xn, qkv, q/k/v, attn/h, hn, f and the
    # per-q-chunk flash accumulators), plus headroom.
    weight_keys = ("g1", "bta1", "wqkv", "bqkv", "wo", "bo",
                   "g2", "bta2", "w1", "b1", "w2", "b2")
    per_layer_w = sum(int(stacked[k].size // L) * stacked[k].dtype.itemsize
                      for k in weight_keys)
    rows = Bb * T
    act_block = Bb * T * H * src.dtype.itemsize
    inter = rows * (4 * H * 4            # x, xn, attn/h, hn (fp32)
                    + 3 * H * (4 + 2)    # qkv fp32 + q/k/v bf16
                    + F * (4 + 2))       # f fp32 + bf16 cast
    inter += Bb * ck * (H * 4 + 2 * ck * 4)   # flash acc + s/p tiles
    vmem_limit = 2 * per_layer_w + 4 * act_block + inter + (8 << 20)

    # Clamp to ~85% of this chip's VMEM (v7x only has 64 MiB/TC).
    try:
        vmem_cap = int(pltpu.get_tpu_info().vmem_capacity_bytes)
    except Exception:
        vmem_cap = 64 << 20
    cap = int(0.85 * vmem_cap)
    vmem_limit = int(min(max(vmem_limit, min(32 << 20, cap)), cap))

    out = pl.pallas_call(
        functools.partial(multi_block_kernel, ck=ck),
        out_shape=jax.ShapeDtypeStruct((B, T, H), src.dtype),
        grid=(B // Bb, L),
        in_specs=in_specs,
        out_specs=out_spec,
        compiler_params=pltpu.CompilerParams(
            dimension_semantics=("parallel", "arbitrary"),
            vmem_limit_bytes=vmem_limit),
    )(*args)

    # TODO(synk): per-layer KV cache (need_cache / v_prev_layer sharing) is not
    # reproduced; returns None like the need_cache=False path.
    return out, None


def init_layer_params(key, hidden, fc_hidden):
    """One BlockWrapper layer's params.  Matmul weights in bf16 (fp32 accumulate
    inside the kernel); biases and LayerNorm params stay fp32."""
    ks = jax.random.split(key, 4)
    s = 0.02
    f32, bf16 = jnp.float32, jnp.bfloat16
    return {
        "g1":   jnp.ones((1, hidden), f32),
        "bta1": jnp.zeros((1, hidden), f32),
        "wqkv": (s * jax.random.normal(ks[0], (hidden, 3 * hidden), f32)).astype(bf16),
        "bqkv": jnp.zeros((1, 3 * hidden), f32),
        "wo":   (s * jax.random.normal(ks[1], (hidden, hidden), f32)).astype(bf16),
        "bo":   jnp.zeros((1, hidden), f32),
        "g2":   jnp.ones((1, hidden), f32),
        "bta2": jnp.zeros((1, hidden), f32),
        "w1":   (s * jax.random.normal(ks[2], (hidden, fc_hidden), f32)).astype(bf16),
        "b1":   jnp.zeros((1, fc_hidden), f32),
        "w2":   (s * jax.random.normal(ks[3], (fc_hidden, hidden), f32)).astype(bf16),
        "b2":   jnp.zeros((1, hidden), f32),
    }


def stack_layer_params(layer_params):
    """Stack per-layer dicts into [L, ...] arrays for the fused kernel."""
    return {k: jnp.stack([p[k] for p in layer_params], axis=0)
            for k in layer_params[0]}


if __name__ == "__main__":
    # NOTE: real deployments should use HIDDEN/FC_HIDDEN that are multiples of
    # 256 (v6e/v7x MXU is 256-wide; 128 suffices on v5e) and Bb*T >= 256 per
    # grid step so matmuls and stores are lane-dense; the demo shapes are kept
    # tiny per the harness contract.
    BATCH, SEQ, HIDDEN, FC_HIDDEN = 2, 8, 32, 32
    NUM_LAYERS = 2

    root = jax.random.PRNGKey(0)
    x_key, *layer_keys = jax.random.split(root, NUM_LAYERS + 1)

    src = jax.random.normal(x_key, (BATCH, SEQ, HIDDEN), jnp.float32)
    params = stack_layer_params(
        [init_layer_params(k, HIDDEN, FC_HIDDEN) for k in layer_keys])

    out, _cache = multi_blocks_forward(src, params, need_cache=False)
    out = jax.block_until_ready(out)

    assert out.shape == (BATCH, SEQ, HIDDEN)
    assert jnp.all(jnp.isfinite(out))
    print("KERNEL_OK")
</pallas_src>

<mosaic_0001>
module attributes {stable_mosaic.version = 11 : i64} {
  func.func @multi_block_kernel(%arg0: i32, %arg1: i32, %arg2: memref<2x8x32xf32, #tpu.memory_space<vmem>>, %arg3: memref<1x1x32xf32, #tpu.memory_space<vmem>>, %arg4: memref<1x1x32xf32, #tpu.memory_space<vmem>>, %arg5: memref<1x32x96xbf16, #tpu.memory_space<vmem>>, %arg6: memref<1x1x96xf32, #tpu.memory_space<vmem>>, %arg7: memref<1x32x32xbf16, #tpu.memory_space<vmem>>, %arg8: memref<1x1x32xf32, #tpu.memory_space<vmem>>, %arg9: memref<1x1x32xf32, #tpu.memory_space<vmem>>, %arg10: memref<1x1x32xf32, #tpu.memory_space<vmem>>, %arg11: memref<1x32x32xbf16, #tpu.memory_space<vmem>>, %arg12: memref<1x1x32xf32, #tpu.memory_space<vmem>>, %arg13: memref<1x32x32xbf16, #tpu.memory_space<vmem>>, %arg14: memref<1x1x32xf32, #tpu.memory_space<vmem>>, %arg15: memref<2x8x32xf32, #tpu.memory_space<vmem>>) attributes {dimension_semantics = [#tpu.dimension_semantics<parallel>, #tpu.dimension_semantics<arbitrary>], iteration_bounds = array<i64: 1, 2>, scalar_prefetch = 0 : i64, scratch_operands = 0 : i64, tpu.core_type = #tpu.core_type<tc>, window_params = [{transform_indices = @transform_0, window_bounds = array<i64: 2, 8, 32>}, {transform_indices = @transform_1, window_bounds = array<i64: 1, 1, 32>}, {transform_indices = @transform_2, window_bounds = array<i64: 1, 1, 32>}, {transform_indices = @transform_3, window_bounds = array<i64: 1, 32, 96>}, {transform_indices = @transform_4, window_bounds = array<i64: 1, 1, 96>}, {transform_indices = @transform_5, window_bounds = array<i64: 1, 32, 32>}, {transform_indices = @transform_6, window_bounds = array<i64: 1, 1, 32>}, {transform_indices = @transform_7, window_bounds = array<i64: 1, 1, 32>}, {transform_indices = @transform_8, window_bounds = array<i64: 1, 1, 32>}, {transform_indices = @transform_9, window_bounds = array<i64: 1, 32, 32>}, {transform_indices = @transform_10, window_bounds = array<i64: 1, 1, 32>}, {transform_indices = @transform_11, window_bounds = array<i64: 1, 32, 32>}, {transform_indices = @transform_12, window_bounds = array<i64: 1, 1, 32>}, {transform_indices = @transform_13, window_bounds = array<i64: 2, 8, 32>}]} {
    %c0_i32 = arith.constant 0 : i32
    %0 = arith.cmpi eq, %arg1, %c0_i32 : i32
    %1 = arith.extui %0 : i1 to i32
    %c0_i32_0 = arith.constant 0 : i32
    %2 = arith.cmpi ne, %1, %c0_i32_0 : i32
    scf.if %2 {
      %c0_68 = arith.constant 0 : index
      %c0_69 = arith.constant 0 : index
      %c0_70 = arith.constant 0 : index
      %150 = vector.load %arg2[%c0_68, %c0_69, %c0_70] : memref<2x8x32xf32, #tpu.memory_space<vmem>>, vector<2x8x32xf32>
      %c0_71 = arith.constant 0 : index
      %c0_72 = arith.constant 0 : index
      %c0_73 = arith.constant 0 : index
      %151 = vector.load %arg15[%c0_71, %c0_72, %c0_73] : memref<2x8x32xf32, #tpu.memory_space<vmem>>, vector<2x8x32xf32>
      tpu.vector_store %arg15[%c0_71, %c0_72, %c0_73], %150 {strides = array<i32>} : memref<2x8x32xf32, #tpu.memory_space<vmem>>, vector<2x8x32xf32>,
    } else {
    }
    %c0 = arith.constant 0 : index
    %c0_1 = arith.constant 0 : index
    %c0_2 = arith.constant 0 : index
    %3 = vector.load %arg15[%c0, %c0_1, %c0_2] : memref<2x8x32xf32, #tpu.memory_space<vmem>>, vector<2x8x32xf32>
    %4 = vector.shape_cast %3 : vector<2x8x32xf32> to vector<16x32xf32>
    %c0_3 = arith.constant 0 : index
    %c0_4 = arith.constant 0 : index
    %c0_5 = arith.constant 0 : index
    %5 = vector.load %arg3[%c0_3, %c0_4, %c0_5] : memref<1x1x32xf32, #tpu.memory_space<vmem>>, vector<1x1x32xf32>
    %6 = vector.shape_cast %5 : vector<1x1x32xf32> to vector<1x32xf32>
    %c0_6 = arith.constant 0 : index
    %c0_7 = arith.constant 0 : index
    %c0_8 = arith.constant 0 : index
    %7 = vector.load %arg4[%c0_6, %c0_7, %c0_8] : memref<1x1x32xf32, #tpu.memory_space<vmem>>, vector<1x1x32xf32>
    %8 = vector.shape_cast %7 : vector<1x1x32xf32> to vector<1x32xf32>
    %cst = arith.constant dense<0.000000e+00> : vector<16xf32>
    %9 = vector.multi_reduction <add>, %4, %cst [1] : vector<16x32xf32> to vector<16xf32>
    %10 = vector.shape_cast %9 : vector<16xf32> to vector<16x1xf32>
    %cst_9 = arith.constant 3.200000e+01 : f32
    %11 = vector.broadcast %cst_9 : f32 to vector<16x1xf32>
    %12 = arith.divf %10, %11 : vector<16x1xf32>
    %13 = vector.broadcast %12 : vector<16x1xf32> to vector<16x32xf32>
    %14 = arith.subf %4, %13 : vector<16x32xf32>
    %15 = arith.mulf %14, %14 : vector<16x32xf32>
    %cst_10 = arith.constant dense<0.000000e+00> : vector<16xf32>
    %16 = vector.multi_reduction <add>, %15, %cst_10 [1] : vector<16x32xf32> to vector<16xf32>
    %17 = vector.shape_cast %16 : vector<16xf32> to vector<16x1xf32>
    %cst_11 = arith.constant 3.200000e+01 : f32
    %18 = vector.broadcast %cst_11 : f32 to vector<16x1xf32>
    %19 = arith.divf %17, %18 : vector<16x1xf32>
    %20 = vector.broadcast %12 : vector<16x1xf32> to vector<16x32xf32>
    %21 = arith.subf %4, %20 : vector<16x32xf32>
    %cst_12 = arith.constant 9.99999974E-6 : f32
    %22 = vector.broadcast %cst_12 : f32 to vector<16x1xf32>
    %23 = arith.addf %19, %22 : vector<16x1xf32>
    %24 = math.rsqrt %23 : vector<16x1xf32>
    %25 = vector.broadcast %24 : vector<16x1xf32> to vector<16x32xf32>
    %26 = arith.mulf %21, %25 : vector<16x32xf32>
    %27 = vector.broadcast %6 : vector<1x32xf32> to vector<16x32xf32>
    %28 = arith.mulf %26, %27 : vector<16x32xf32>
    %29 = vector.broadcast %8 : vector<1x32xf32> to vector<16x32xf32>
    %30 = arith.addf %28, %29 : vector<16x32xf32>
    %31 = arith.truncf %30 : vector<16x32xf32> to vector<16x32xbf16>
    %c0_13 = arith.constant 0 : index
    %c0_14 = arith.constant 0 : index
    %c0_15 = arith.constant 0 : index
    %32 = vector.load %arg5[%c0_13, %c0_14, %c0_15] : memref<1x32x96xbf16, #tpu.memory_space<vmem>>, vector<1x32x96xbf16>
    %33 = vector.shape_cast %32 : vector<1x32x96xbf16> to vector<32x96xbf16>
    %cst_16 = arith.constant dense<0.000000e+00> : vector<16x96xf32>
    %34 = tpu.matmul %31, %33, %cst_16 {dimension_numbers = #tpu.dot_dimension_numbers<[1], [0], [0], [1], [0, 0, 1, 1], [], []>} : vector<16x32xbf16>, vector<32x96xbf16>, vector<16x96xf32> -> vector<16x96xf32>
    %c0_17 = arith.constant 0 : index
    %c0_18 = arith.constant 0 : index
    %c0_19 = arith.constant 0 : index
    %35 = vector.load %arg6[%c0_17, %c0_18, %c0_19] : memref<1x1x96xf32, #tpu.memory_space<vmem>>, vector<1x1x96xf32>
    %36 = vector.shape_cast %35 : vector<1x1x96xf32> to vector<1x96xf32>
    %37 = vector.broadcast %36 : vector<1x96xf32> to vector<16x96xf32>
    %38 = arith.addf %34, %37 : vector<16x96xf32>
    %39 = vector.extract_strided_slice %38 {offsets = [0, 0], sizes = [16, 32], strides = [1, 1]} : vector<16x96xf32> to vector<16x32xf32>
    %cst_20 = arith.constant 0.176776692 : f32
    %40 = vector.broadcast %cst_20 : f32 to vector<16x32xf32>
    %41 = arith.mulf %39, %40 : vector<16x32xf32>
    %42 = arith.truncf %41 : vector<16x32xf32> to vector<16x32xbf16>
    %43 = vector.shape_cast %42 : vector<16x32xbf16> to vector<2x8x32xbf16>
    %44 = vector.extract_strided_slice %38 {offsets = [0, 32], sizes = [16, 32], strides = [1, 1]} : vector<16x96xf32> to vector<16x32xf32>
    %45 = arith.truncf %44 : vector<16x32xf32> to vector<16x32xbf16>
    %46 = vector.shape_cast %45 : vector<16x32xbf16> to vector<2x8x32xbf16>
    %47 = vector.extract_strided_slice %38 {offsets = [0, 64], sizes = [16, 32], strides = [1, 1]} : vector<16x96xf32> to vector<16x32xf32>
    %48 = arith.truncf %47 : vector<16x32xf32> to vector<16x32xbf16>
    %49 = vector.shape_cast %48 : vector<16x32xbf16> to vector<2x8x32xbf16>
    %50 = tpu.iota {dimensions = array<i32: 0>} : vector<8x8xi32>
    %51 = tpu.iota {dimensions = array<i32: 1>} : vector<8x8xi32>
    %52 = arith.cmpi sle, %51, %50 : vector<8x8xi32>
    %53 = vector.shape_cast %52 : vector<8x8xi1> to vector<1x8x8xi1>
    %cst_21 = arith.constant -1.000000e+30 : f32
    %54 = vector.broadcast %cst_21 : f32 to vector<2x8x1xf32>
    %cst_22 = arith.constant 0.000000e+00 : f32
    %55 = vector.broadcast %cst_22 : f32 to vector<2x8x1xf32>
    %cst_23 = arith.constant 0.000000e+00 : f32
    %56 = vector.broadcast %cst_23 : f32 to vector<2x8x32xf32>
    "tpu.trace_start"() <{level = 10 : i32, message = "bqd,bkd->bqk"}> : () -> ()
    %cst_24 = arith.constant dense<0.000000e+00> : vector<2x8x8xf32>
    %57 = tpu.matmul %43, %46, %cst_24 {dimension_numbers = #tpu.dot_dimension_numbers<[2], [2], [1], [1], [0, 0, 0, 1, 1, 1], [0], [0]>} : vector<2x8x32xbf16>, vector<2x8x32xbf16>, vector<2x8x8xf32> -> vector<2x8x8xf32>
    %cst_25 = arith.constant -1.000000e+30 : f32
    "tpu.trace_stop"() : () -> ()
    %58 = vector.shape_cast %53 : vector<1x8x8xi1> to vector<1x8x8xi1>
    %59 = vector.broadcast %58 : vector<1x8x8xi1> to vector<2x8x8xi1>
    %60 = vector.broadcast %cst_25 : f32 to vector<2x8x8xf32>
    %61 = arith.select %59, %57, %60 : vector<2x8x8xi1>, vector<2x8x8xf32>
    %cst_26 = arith.constant dense<0xFF800000> : vector<2x8xf32>
    %62 = vector.multi_reduction <maximumf>, %61, %cst_26 [2] : vector<2x8x8xf32> to vector<2x8xf32>
    %63 = vector.shape_cast %62 : vector<2x8xf32> to vector<2x8x1xf32>
    %64 = arith.maximumf %54, %63 : vector<2x8x1xf32>
    %65 = arith.subf %54, %64 : vector<2x8x1xf32>
    %66 = math.exp %65 : vector<2x8x1xf32>
    %67 = vector.broadcast %64 : vector<2x8x1xf32> to vector<2x8x8xf32>
    %68 = arith.subf %61, %67 : vector<2x8x8xf32>
    %69 = math.exp %68 : vector<2x8x8xf32>
    %70 = arith.mulf %66, %55 : vector<2x8x1xf32>
    %cst_27 = arith.constant dense<0.000000e+00> : vector<2x8xf32>
    %71 = vector.multi_reduction <add>, %69, %cst_27 [2] : vector<2x8x8xf32> to vector<2x8xf32>
    %72 = vector.shape_cast %71 : vector<2x8xf32> to vector<2x8x1xf32>
    %73 = arith.addf %70, %72 : vector<2x8x1xf32>
    %74 = vector.broadcast %66 : vector<2x8x1xf32> to vector<2x8x32xf32>
    %75 = arith.mulf %74, %56 : vector<2x8x32xf32>
    %76 = arith.truncf %69 : vector<2x8x8xf32> to vector<2x8x8xbf16>
    "tpu.trace_start"() <{level = 10 : i32, message = "bqk,bkd->bqd"}> : () -> ()
    %cst_28 = arith.constant dense<0.000000e+00> : vector<2x8x32xf32>
    %77 = tpu.matmul %76, %49, %cst_28 {dimension_numbers = #tpu.dot_dimension_numbers<[2], [1], [1], [2], [0, 0, 0, 1, 1, 2], [0], [0]>} : vector<2x8x8xbf16>, vector<2x8x32xbf16>, vector<2x8x32xf32> -> vector<2x8x32xf32>
    "tpu.trace_stop"() : () -> ()
    %78 = arith.addf %75, %77 : vector<2x8x32xf32>
    %79 = tpu.reciprocal %73 {approx = true} : vector<2x8x1xf32> -> vector<2x8x1xf32>
    %80 = vector.broadcast %79 : vector<2x8x1xf32> to vector<2x8x32xf32>
    %81 = arith.mulf %78, %80 : vector<2x8x32xf32>
    %82 = vector.shape_cast %81 : vector<2x8x32xf32> to vector<16x32xf32>
    %83 = arith.truncf %82 : vector<16x32xf32> to vector<16x32xbf16>
    %c0_29 = arith.constant 0 : index
    %c0_30 = arith.constant 0 : index
    %c0_31 = arith.constant 0 : index
    %84 = vector.load %arg7[%c0_29, %c0_30, %c0_31] : memref<1x32x32xbf16, #tpu.memory_space<vmem>>, vector<1x32x32xbf16>
    %85 = vector.shape_cast %84 : vector<1x32x32xbf16> to vector<32x32xbf16>
    %cst_32 = arith.constant dense<0.000000e+00> : vector<16x32xf32>
    %86 = tpu.matmul %83, %85, %cst_32 {dimension_numbers = #tpu.dot_dimension_numbers<[1], [0], [0], [1], [0, 0, 1, 1], [], []>} : vector<16x32xbf16>, vector<32x32xbf16>, vector<16x32xf32> -> vector<16x32xf32>
    %c0_33 = arith.constant 0 : index
    %c0_34 = arith.constant 0 : index
    %c0_35 = arith.constant 0 : index
    %87 = vector.load %arg8[%c0_33, %c0_34, %c0_35] : memref<1x1x32xf32, #tpu.memory_space<vmem>>, vector<1x1x32xf32>
    %88 = vector.shape_cast %87 : vector<1x1x32xf32> to vector<1x32xf32>
    %89 = vector.broadcast %88 : vector<1x32xf32> to vector<16x32xf32>
    %90 = arith.addf %86, %89 : vector<16x32xf32>
    %91 = arith.addf %90, %4 : vector<16x32xf32>
    %c0_36 = arith.constant 0 : index
    %c0_37 = arith.constant 0 : index
    %c0_38 = arith.constant 0 : index
    %92 = vector.load %arg9[%c0_36, %c0_37, %c0_38] : memref<1x1x32xf32, #tpu.memory_space<vmem>>, vector<1x1x32xf32>
    %93 = vector.shape_cast %92 : vector<1x1x32xf32> to vector<1x32xf32>
    %c0_39 = arith.constant 0 : index
    %c0_40 = arith.constant 0 : index
    %c0_41 = arith.constant 0 : index
    %94 = vector.load %arg10[%c0_39, %c0_40, %c0_41] : memref<1x1x32xf32, #tpu.memory_space<vmem>>, vector<1x1x32xf32>
    %95 = vector.shape_cast %94 : vector<1x1x32xf32> to vector<1x32xf32>
    %cst_42 = arith.constant dense<0.000000e+00> : vector<16xf32>
    %96 = vector.multi_reduction <add>, %91, %cst_42 [1] : vector<16x32xf32> to vector<16xf32>
    %97 = vector.shape_cast %96 : vector<16xf32> to vector<16x1xf32>
    %cst_43 = arith.constant 3.200000e+01 : f32
    %98 = vector.broadcast %cst_43 : f32 to vector<16x1xf32>
    %99 = arith.divf %97, %98 : vector<16x1xf32>
    %100 = vector.broadcast %99 : vector<16x1xf32> to vector<16x32xf32>
    %101 = arith.subf %91, %100 : vector<16x32xf32>
    %102 = arith.mulf %101, %101 : vector<16x32xf32>
    %cst_44 = arith.constant dense<0.000000e+00> : vector<16xf32>
    %103 = vector.multi_reduction <add>, %102, %cst_44 [1] : vector<16x32xf32> to vector<16xf32>
    %104 = vector.shape_cast %103 : vector<16xf32> to vector<16x1xf32>
    %cst_45 = arith.constant 3.200000e+01 : f32
    %105 = vector.broadcast %cst_45 : f32 to vector<16x1xf32>
    %106 = arith.divf %104, %105 : vector<16x1xf32>
    %107 = vector.broadcast %99 : vector<16x1xf32> to vector<16x32xf32>
    %108 = arith.subf %91, %107 : vector<16x32xf32>
    %cst_46 = arith.constant 9.99999974E-6 : f32
    %109 = vector.broadcast %cst_46 : f32 to vector<16x1xf32>
    %110 = arith.addf %106, %109 : vector<16x1xf32>
    %111 = math.rsqrt %110 : vector<16x1xf32>
    %112 = vector.broadcast %111 : vector<16x1xf32> to vector<16x32xf32>
    %113 = arith.mulf %108, %112 : vector<16x32xf32>
    %114 = vector.broadcast %93 : vector<1x32xf32> to vector<16x32xf32>
    %115 = arith.mulf %113, %114 : vector<16x32xf32>
    %116 = vector.broadcast %95 : vector<1x32xf32> to vector<16x32xf32>
    %117 = arith.addf %115, %116 : vector<16x32xf32>
    %118 = arith.truncf %117 : vector<16x32xf32> to vector<16x32xbf16>
    %c0_47 = arith.constant 0 : index
    %c0_48 = arith.constant 0 : index
    %c0_49 = arith.constant 0 : index
    %119 = vector.load %arg11[%c0_47, %c0_48, %c0_49] : memref<1x32x32xbf16, #tpu.memory_space<vmem>>, vector<1x32x32xbf16>
    %120 = vector.shape_cast %119 : vector<1x32x32xbf16> to vector<32x32xbf16>
    %cst_50 = arith.constant dense<0.000000e+00> : vector<16x32xf32>
    %121 = tpu.matmul %118, %120, %cst_50 {dimension_numbers = #tpu.dot_dimension_numbers<[1], [0], [0], [1], [0, 0, 1, 1], [], []>} : vector<16x32xbf16>, vector<32x32xbf16>, vector<16x32xf32> -> vector<16x32xf32>
    %c0_51 = arith.constant 0 : index
    %c0_52 = arith.constant 0 : index
    %c0_53 = arith.constant 0 : index
    %122 = vector.load %arg12[%c0_51, %c0_52, %c0_53] : memref<1x1x32xf32, #tpu.memory_space<vmem>>, vector<1x1x32xf32>
    %123 = vector.shape_cast %122 : vector<1x1x32xf32> to vector<1x32xf32>
    %124 = vector.broadcast %123 : vector<1x32xf32> to vector<16x32xf32>
    %125 = arith.addf %121, %124 : vector<16x32xf32>
    %126 = arith.mulf %125, %125 : vector<16x32xf32>
    %127 = arith.mulf %125, %126 : vector<16x32xf32>
    %cst_54 = arith.constant 4.471500e-02 : f32
    %128 = vector.broadcast %cst_54 : f32 to vector<16x32xf32>
    %129 = arith.mulf %128, %127 : vector<16x32xf32>
    %130 = arith.addf %125, %129 : vector<16x32xf32>
    %cst_55 = arith.constant 0.797884583 : f32
    %131 = vector.broadcast %cst_55 : f32 to vector<16x32xf32>
    %132 = arith.mulf %131, %130 : vector<16x32xf32>
    %133 = math.tanh %132 : vector<16x32xf32>
    %cst_56 = arith.constant 1.000000e+00 : f32
    %134 = vector.broadcast %cst_56 : f32 to vector<16x32xf32>
    %135 = arith.addf %134, %133 : vector<16x32xf32>
    %cst_57 = arith.constant 5.000000e-01 : f32
    %136 = vector.broadcast %cst_57 : f32 to vector<16x32xf32>
    %137 = arith.mulf %136, %135 : vector<16x32xf32>
    %138 = arith.mulf %125, %137 : vector<16x32xf32>
    %139 = arith.truncf %138 : vector<16x32xf32> to vector<16x32xbf16>
    %c0_58 = arith.constant 0 : index
    %c0_59 = arith.constant 0 : index
    %c0_60 = arith.constant 0 : index
    %140 = vector.load %arg13[%c0_58, %c0_59, %c0_60] : memref<1x32x32xbf16, #tpu.memory_space<vmem>>, vector<1x32x32xbf16>
    %141 = vector.shape_cast %140 : vector<1x32x32xbf16> to vector<32x32xbf16>
    %cst_61 = arith.constant dense<0.000000e+00> : vector<16x32xf32>
    %142 = tpu.matmul %139, %141, %cst_61 {dimension_numbers = #tpu.dot_dimension_numbers<[1], [0], [0], [1], [0, 0, 1, 1], [], []>} : vector<16x32xbf16>, vector<32x32xbf16>, vector<16x32xf32> -> vector<16x32xf32>
    %c0_62 = arith.constant 0 : index
    %c0_63 = arith.constant 0 : index
    %c0_64 = arith.constant 0 : index
    %143 = vector.load %arg14[%c0_62, %c0_63, %c0_64] : memref<1x1x32xf32, #tpu.memory_space<vmem>>, vector<1x1x32xf32>
    %144 = vector.shape_cast %143 : vector<1x1x32xf32> to vector<1x32xf32>
    %145 = vector.broadcast %144 : vector<1x32xf32> to vector<16x32xf32>
    %146 = arith.addf %142, %145 : vector<16x32xf32>
    %147 = arith.addf %91, %146 : vector<16x32xf32>
    %148 = vector.shape_cast %147 : vector<16x32xf32> to vector<2x8x32xf32>
    %c0_65 = arith.constant 0 : index
    %c0_66 = arith.constant 0 : index
    %c0_67 = arith.constant 0 : index
    %149 = vector.load %arg15[%c0_65, %c0_66, %c0_67] : memref<2x8x32xf32, #tpu.memory_space<vmem>>, vector<2x8x32xf32>
    tpu.vector_store %arg15[%c0_65, %c0_66, %c0_67], %148 {strides = array<i32>} : memref<2x8x32xf32, #tpu.memory_space<vmem>>, vector<2x8x32xf32>,
    return
  }
  func.func @transform_0(%arg0: i32, %arg1: i32) -> (i32, i32, i32) {
    %c0_i32 = arith.constant 0 : i32
    %c0_i32_0 = arith.constant 0 : i32
    %c0_i32_1 = arith.constant 0 : i32
    return %arg0, %c0_i32, %c0_i32_0 : i32, i32, i32
  }
  func.func @transform_1(%arg0: i32, %arg1: i32) -> (i32, i32, i32) {
    %c0_i32 = arith.constant 0 : i32
    %c0_i32_0 = arith.constant 0 : i32
    %c0_i32_1 = arith.constant 0 : i32
    return %arg1, %c0_i32, %c0_i32_0 : i32, i32, i32
  }
  func.func @transform_2(%arg0: i32, %arg1: i32) -> (i32, i32, i32) {
    %c0_i32 = arith.constant 0 : i32
    %c0_i32_0 = arith.constant 0 : i32
    %c0_i32_1 = arith.constant 0 : i32
    return %arg1, %c0_i32, %c0_i32_0 : i32, i32, i32
  }
  func.func @transform_3(%arg0: i32, %arg1: i32) -> (i32, i32, i32) {
    %c0_i32 = arith.constant 0 : i32
    %c0_i32_0 = arith.constant 0 : i32
    %c0_i32_1 = arith.constant 0 : i32
    return %arg1, %c0_i32, %c0_i32_0 : i32, i32, i32
  }
  func.func @transform_4(%arg0: i32, %arg1: i32) -> (i32, i32, i32) {
    %c0_i32 = arith.constant 0 : i32
    %c0_i32_0 = arith.constant 0 : i32
    %c0_i32_1 = arith.constant 0 : i32
    return %arg1, %c0_i32, %c0_i32_0 : i32, i32, i32
  }
  func.func @transform_5(%arg0: i32, %arg1: i32) -> (i32, i32, i32) {
    %c0_i32 = arith.constant 0 : i32
    %c0_i32_0 = arith.constant 0 : i32
    %c0_i32_1 = arith.constant 0 : i32
    return %arg1, %c0_i32, %c0_i32_0 : i32, i32, i32
  }
  func.func @transform_6(%arg0: i32, %arg1: i32) -> (i32, i32, i32) {
    %c0_i32 = arith.constant 0 : i32
    %c0_i32_0 = arith.constant 0 : i32
    %c0_i32_1 = arith.constant 0 : i32
    return %arg1, %c0_i32, %c0_i32_0 : i32, i32, i32
  }
  func.func @transform_7(%arg0: i32, %arg1: i32) -> (i32, i32, i32) {
    %c0_i32 = arith.constant 0 : i32
    %c0_i32_0 = arith.constant 0 : i32
    %c0_i32_1 = arith.constant 0 : i32
    return %arg1, %c0_i32, %c0_i32_0 : i32, i32, i32
  }
  func.func @transform_8(%arg0: i32, %arg1: i32) -> (i32, i32, i32) {
    %c0_i32 = arith.constant 0 : i32
    %c0_i32_0 = arith.constant 0 : i32
    %c0_i32_1 = arith.constant 0 : i32
    return %arg1, %c0_i32, %c0_i32_0 : i32, i32, i32
  }
  func.func @transform_9(%arg0: i32, %arg1: i32) -> (i32, i32, i32) {
    %c0_i32 = arith.constant 0 : i32
    %c0_i32_0 = arith.constant 0 : i32
    %c0_i32_1 = arith.constant 0 : i32
    return %arg1, %c0_i32, %c0_i32_0 : i32, i32, i32
  }
  func.func @transform_10(%arg0: i32, %arg1: i32) -> (i32, i32, i32) {
    %c0_i32 = arith.constant 0 : i32
    %c0_i32_0 = arith.constant 0 : i32
    %c0_i32_1 = arith.constant 0 : i32
    return %arg1, %c0_i32, %c0_i32_0 : i32, i32, i32
  }
  func.func @transform_11(%arg0: i32, %arg1: i32) -> (i32, i32, i32) {
    %c0_i32 = arith.constant 0 : i32
    %c0_i32_0 = arith.constant 0 : i32
    %c0_i32_1 = arith.constant 0 : i32
    return %arg1, %c0_i32, %c0_i32_0 : i32, i32, i32
  }
  func.func @transform_12(%arg0: i32, %arg1: i32) -> (i32, i32, i32) {
    %c0_i32 = arith.constant 0 : i32
    %c0_i32_0 = arith.constant 0 : i32
    %c0_i32_1 = arith.constant 0 : i32
    return %arg1, %c0_i32, %c0_i32_0 : i32, i32, i32
  }
  func.func @transform_13(%arg0: i32, %arg1: i32) -> (i32, i32, i32) {
    %c0_i32 = arith.constant 0 : i32
    %c0_i32_0 = arith.constant 0 : i32
    %c0_i32_1 = arith.constant 0 : i32
    return %arg0, %c0_i32, %c0_i32_0 : i32, i32, i32
  }
}

</mosaic_0001>

<bundles_post_ra>
// kernel: tpu_custom_call.1
= control target key start
LH: loop header
LB: loop body
LE: loop exit
PB: predicated region body
PF: predicated region fallthrough
CT: control target
= control target key end

     0   :  { %s3024_s0 = inlined_call_operand.hbm [shape: f32[2,8,32], index: 0, kind: input, shape index: {}]   ;;  %s3025_s1 = inlined_call_operand.vmem [shape: f32[2,1,32], index: 1, kind: input, shape index: {}]   ;;  %s3026_s2 = inlined_call_operand.hbm [shape: f32[2,1,32], index: 2, kind: input, shape index: {}]   ;;  %s3027_s3 = inlined_call_operand.hbm [shape: bf16[2,32,96], index: 3, kind: input, shape index: {}]   ;;  %s3028_s4 = inlined_call_operand.hbm [shape: f32[2,1,96], index: 4, kind: input, shape index: {}]   ;;  %s3029_s5 = inlined_call_operand.hbm [shape: bf16[2,32,32], index: 5, kind: input, shape index: {}]   ;;  %s3030_s6 = inlined_call_operand.hbm [shape: f32[2,1,32], index: 6, kind: input, shape index: {}]   ;;  %s3031_s7 = inlined_call_operand.hbm [shape: f32[2,1,32], index: 7, kind: input, shape index: {}]   ;;  %s3032_s8 = inlined_call_operand.hbm [shape: f32[2,1,32], index: 8, kind: input, shape index: {}]   ;;  %s3033_s9 = inlined_call_operand.vmem [shape: bf16[2,32,32], index: 9, kind: input, shape index: {}]   ;;  %s3034_s10 = inlined_call_operand.vmem [shape: f32[2,1,32], index: 10, kind: input, shape index: {}]   ;;  %s3035_s11 = inlined_call_operand.hbm [shape: bf16[2,32,32], index: 11, kind: input, shape index: {}]   ;;  %s3036_s12 = inlined_call_operand.vmem [shape: f32[2,1,32], index: 12, kind: input, shape index: {}]   ;;  %s3037_s13 = inlined_call_operand.hbm [shape: f32[2,8,32], index: 13, kind: output, shape index: {}]  }
   0x1   :  { %3051 = sst [smem:[#allocation29_spill]] %s3025_s1 }
   0x2   :  { %3052 = sst [smem:[#allocation30_spill]] %s3026_s2 }
   0x3   :  { %3053 = sst [smem:[#allocation31_spill]] %s3028_s4 }
   0x4   :  { %3054 = sst [smem:[#allocation32_spill]] %s3030_s6 }
   0x5   :  { %3055 = sst [smem:[#allocation33_spill]] %s3032_s8 }
   0x6   :  { %3056 = sst [smem:[#allocation34_spill]] %s3033_s9 }
   0x7   :  { %3057 = sst [smem:[#allocation35_spill]] %s3034_s10 }
   0x8   :  { %3058 = sst [smem:[#allocation36_spill]] %s3036_s12 }
   0x9   :  { %3059 = sst [smem:[#allocation37_spill]] %s3037_s13 }
   0xa   :  { %18 = vsyncpa [#allocation3], 0 }
   0xb   :  { %19 = vsyncpa [#allocation6], 0 }
   0xc   :  { %21 = vsyncpa [#allocation6 + $0x1], 0 }
   0xd   :  { %22 = vsyncpa [#allocation9], 0 }
   0xe   :  { %24 = vsyncpa [#allocation9 + $0x1], 0 }
   0xf   :  { %25 = vsyncpa [#allocation12], 0 }
  0x10   :  { %27 = vsyncpa [#allocation12 + $0x1], 0 }
  0x11   :  { %28 = vsyncpa [#allocation15], 0 }
  0x12   :  { %30 = vsyncpa [#allocation15 + $0x1], 0 }
  0x13   :  { %31 = vsyncpa [#allocation4], 0  ;;  %s2450_s25 = smov 0   ;;  %s2452_s26 = smov 0  }
  0x14   :  { %s2454_s27 = smov 0   ;;  %s2456_s28 = smov 0  }
  0x15   :  { %s2458_s29 = smov 0   ;;  %s2460_s30 = smov 0  }
  0x16 LB: > { %3060 = sst [smem:[#allocation24_spill]] %s2346_s27  ;;  %s46_s14 = sadd.s32 1, %s2354_s29  ;;  %s2358_s30 = sphi %s2460_s30, %s37_s30   ;;  %s2354_s29 = sphi %s2458_s29, %s3111_s29   ;;  %s2350_s28 = sphi %s2456_s28, %s3110_s28   ;;  %s2346_s27 = sphi %s2454_s27, %s3109_s27   ;;  %s2342_s26 = sphi %s2452_s26, %s3113_s26   ;;  %s2338_s25 = sphi %s2450_s25, %s3112_s25  }
  0x17   : > { %3061 = sst [smem:[#allocation25_spill]] %s2354_s29  ;;  %s108_s15 = sadd.s32 1, %s2346_s27 }
  0x18   : > { %3062 = sst [smem:[#allocation26_spill]] %s2358_s30  ;;  %p47_p0 = scmp.ge.s32.totalorder %s46_s14, 2 }
  0x19   : > { %p115_p1 = scmp.ne.s32.totalorder %s2346_s27, %s2342_s26  ;;  %p116_p2 = scmp.eq.s32.totalorder %s2358_s30, 0 }
  0x1a   : > { %s3115_s14 = smov (%p47_p0, %s46_s14), 0  ;;  %p1898_p4 = scmp.lt.s32.totalorder %s2358_s30, 2 }
  0x1b   : > { %3063 = sst [smem:[#allocation27_spill]] %s3115_s14  ;;  %p117_p3 = por %p116_p2, %p115_p1 }
  0x1c   : > { %s105_s16 = ssub.s32 %s2354_s29, %s3115_s14  ;;  %s2491_s17 = sand.u32 1, %s2358_s30  }
  0x1d   : > { %p106_p5 = scmp.eq.s32.totalorder %s105_s16, 0  ;;  %s2494_s18 = sand.u32 1, %s2346_s27  }
  0x1e   : > { %s2497_s19 = sshll.u32 %s2354_s29, 4  ;;  %s3065_s2 = sld [smem:[#allocation30_spill]] }
  0x1f   : > { %s2500_s20 = scalar_select %p106_p5, %s2346_s27, %s108_s15  }
  0x20   : > { %s456_s24 = scalar_lea.vmem [#allocation5], %s2494_s18  ;;  %p2509_p6 = pnand %p1898_p4, %p117_p3 }
  0x21   : > { %3064 = sst [smem:[#allocation28_spill]] %s2500_s20  ;;  %s463_s14 = sshll.u32 %s456_s24, 4  ;;  %s2513_s14 = int_to_ptr.vmem [resolvable:$true] %s463_s14 }
  0x22   : > { %s3066_s16 = scalar_select %p2509_p6, 1, 0 }
  0x23   : > { %p2520_p8 = pneg %p2509_p6 }
  0x24   : > { %s2506_s23 = scalar_lea.hbm %s3065_s2, %s2497_s19  ;;  %s1999_s27 = scalar_lea.hbm %s3065_s2, 32 }
  0x25   : > { %s1994_s20 = scalar_lea.hbm %s2506_s23, 16  ;;  %p2000_p11 = scmp.lt.u32.totalorder %s2506_s23, %s3065_s2 }
  0x26   : > { %p1995_p7 = scmp.ne.s32.totalorder %s2506_s23, %s1994_s20  ;;  %p2001_p12 = scmp.lt.u32.totalorder %s1999_s27, %s1994_s20 }
  0x27   : > { %s3067_s21 = scalar_select %p2520_p8, 1, 0 }
  0x28   : > { %p1997_p9 = pnand %p2520_p8, %p1995_p7  ;;  %p2002_p13 = por %p2001_p12, %p2000_p11 }
  0x29   : > { %p2003_p0 = scmp.lt.u32.totalorder %s1994_s20, %s2506_s23 }
  0x2a   : > { %p1998_p10 = pneg %p1997_p9 }
  0x2b   : > { %p2004_p1 = por %p2003_p0, %p2002_p13 }
  0x2d   : > { %p2005_p2 = pnand %p2004_p1, %p1998_p10 }
  0x2f   : > { %2008 = shalt.err (!%p2005_p2)
}
  0x30   : > { %s2009_s15 = scalar_lea.vmem %s2513_s14, 16  ;;  %s2360_s22 = smov [#allocation5]  }
  0x31   : > { %p2010_p3 = scmp.ne.s32.totalorder %s2513_s14, %s2009_s15  ;;  %s2014_s24 = sshll.u32 %s2360_s22, 4  ;;  %s2015_s24 = int_to_ptr.vmem [resolvable:$false] %s2014_s24 }
  0x32   : > { %s2016_s12 = scalar_lea.vmem %s2015_s24, 32  ;;  %p2017_p7 = scmp.lt.s32.totalorder %s2513_s14, %s2015_s24 }
  0x33   : > { %p2012_p4 = pnand %p2010_p3, %p2520_p8  ;;  %p2018_p9 = scmp.lt.s32.totalorder %s2016_s12, %s2009_s15 }
  0x35   : > { %p2013_p5 = pneg %p2012_p4  ;;  %p2019_p11 = por %p2018_p9, %p2017_p7 }
  0x37   : > { %p2020_p12 = pnand %p2019_p11, %p2013_p5 }
  0x39   : > { %2023 = shalt.err (!%p2020_p12)
}
  0x3a   : > { %s3068_s13 = scalar_lea.sflag [#allocation6], %s2491_s17  ;;  %s3069_s4 = sld [smem:[#allocation31_spill]] }
  0x3b   : > { %1875 = dma.hbm_to_vmem [thread:$0]  (!%p2509_p6), %s2506_s23, 16, %s2513_s14, %s3068_s13  }
  0x3c   : > { %s494_s15 = scalar_lea.vmem [#allocation8], %s2494_s18 }
  0x3d   : > { %s501_s24 = sshll.u32 %s494_s15, 4  ;;  %s502_s24 = int_to_ptr.vmem [resolvable:$true] %s501_s24 }
  0x40   : > { %s2549_s22 = scalar_lea.hbm %s3069_s4, %s2497_s19  ;;  %s2029_s23 = scalar_lea.hbm %s3069_s4, 32 }
  0x41   : > { %s2024_s2 = scalar_lea.hbm %s2549_s22, 16  ;;  %p2030_p1 = scmp.lt.u32.totalorder %s2549_s22, %s3069_s4 }
  0x42   : > { %p2025_p10 = scmp.ne.s32.totalorder %s2549_s22, %s2024_s2  ;;  %p2031_p2 = scmp.lt.u32.totalorder %s2029_s23, %s2024_s2 }
  0x43   : > { %p2033_p4 = scmp.lt.u32.totalorder %s2024_s2, %s2549_s22 }
  0x44   : > { %p2027_p13 = pnand %p2025_p10, %p2520_p8  ;;  %p2032_p3 = por %p2031_p2, %p2030_p1 }
  0x46   : > { %p2028_p0 = pneg %p2027_p13  ;;  %p2034_p5 = por %p2033_p4, %p2032_p3 }
  0x48   : > { %p2035_p7 = pnand %p2034_p5, %p2028_p0 }
  0x4a   : > { %2038 = shalt.err (!%p2035_p7)
}
  0x4b   : > { %s2039_s20 = scalar_lea.vmem %s502_s24, 16  ;;  %s2361_s15 = smov [#allocation8]  }
  0x4c   : > { %p2040_p9 = scmp.ne.s32.totalorder %s502_s24, %s2039_s20  ;;  %s2044_s12 = sshll.u32 %s2361_s15, 4  ;;  %s2045_s12 = int_to_ptr.vmem [resolvable:$false] %s2044_s12 }
  0x4d   : > { %s2046_s10 = scalar_lea.vmem %s2045_s12, 32  ;;  %p2047_p10 = scmp.lt.s32.totalorder %s502_s24, %s2045_s12 }
  0x4e   : > { %p2042_p11 = pnand %p2040_p9, %p2520_p8  ;;  %p2048_p13 = scmp.lt.s32.totalorder %s2046_s10, %s2039_s20 }
  0x50   : > { %p2043_p12 = pneg %p2042_p11  ;;  %p2049_p6 = por %p2048_p13, %p2047_p10 }
  0x52   : > { %p2050_p1 = pnand %p2049_p6, %p2043_p12 }
  0x54   : > { %2053 = shalt.err (!%p2050_p1)
}
  0x55   : > { %p3070_p2 = scmp.ne.s32.totalorder %s3066_s16, 0  ;;  %s3071_s2 = scalar_lea.sflag [#allocation9], %s2491_s17 }
  0x56   : > { %s3072_s6 = sld [smem:[#allocation32_spill]]  ;;  %s532_s12 = scalar_lea.vmem [#allocation11], %s2494_s18 }
  0x57   : > { %1881 = dma.hbm_to_vmem [thread:$0]  (!%p3070_p2), %s2549_s22, 16, %s502_s24, %s3071_s2  }
  0x58   : > { %s539_s27 = sshll.u32 %s532_s12, 4  ;;  %s540_s27 = int_to_ptr.vmem [resolvable:$true] %s539_s27 }
  0x5c   : > { %s2576_s13 = scalar_lea.hbm %s3072_s6, %s2497_s19  ;;  %s2059_s24 = scalar_lea.hbm %s3072_s6, 32 }
  0x5d   : > { %s2054_s15 = scalar_lea.hbm %s2576_s13, 16  ;;  %p2060_p4 = scmp.lt.u32.totalorder %s2576_s13, %s3072_s6 }
  0x5e   : > { %p2055_p6 = scmp.ne.s32.totalorder %s2576_s13, %s2054_s15  ;;  %p2061_p5 = scmp.lt.u32.totalorder %s2059_s24, %s2054_s15 }
  0x5f   : > { %p2063_p9 = scmp.lt.u32.totalorder %s2054_s15, %s2576_s13 }
  0x60   : > { %p2057_p0 = pnand %p2055_p6, %p2520_p8  ;;  %p2062_p7 = por %p2061_p5, %p2060_p4 }
  0x62   : > { %p2058_p3 = pneg %p2057_p0  ;;  %p2064_p11 = por %p2063_p9, %p2062_p7 }
  0x64   : > { %p2065_p12 = pnand %p2064_p11, %p2058_p3 }
  0x66   : > { %2068 = shalt.err (!%p2065_p12)
}
  0x67   : > { %s2069_s23 = scalar_lea.vmem %s540_s27, 16  ;;  %s2362_s12 = smov [#allocation11]  }
  0x68   : > { %p2070_p10 = scmp.ne.s32.totalorder %s540_s27, %s2069_s23  ;;  %s2074_s20 = sshll.u32 %s2362_s12, 4  ;;  %s2075_s20 = int_to_ptr.vmem [resolvable:$false] %s2074_s20 }
  0x69   : > { %s2076_s10 = scalar_lea.vmem %s2075_s20, 32  ;;  %p2077_p6 = scmp.lt.s32.totalorder %s540_s27, %s2075_s20 }
  0x6a   : > { %p2072_p13 = pnand %p2070_p10, %p2520_p8  ;;  %p2078_p0 = scmp.lt.s32.totalorder %s2076_s10, %s2069_s23 }
  0x6c   : > { %p2073_p1 = pneg %p2072_p13  ;;  %p2079_p2 = por %p2078_p0, %p2077_p6 }
  0x6e   : > { %p2080_p4 = pnand %p2079_p2, %p2073_p1 }
  0x70   : > { %2083 = shalt.err (!%p2080_p4)
}
  0x71   : > { %p3073_p5 = scmp.ne.s32.totalorder %s3066_s16, 0  ;;  %s3074_s15 = scalar_lea.sflag [#allocation12], %s2491_s17 }
  0x72   : > { %s3075_s8 = sld [smem:[#allocation33_spill]]  ;;  %s566_s20 = scalar_lea.vmem [#allocation14], %s2494_s18 }
  0x73   : > { %1887 = dma.hbm_to_vmem [thread:$0]  (!%p3073_p5), %s2576_s13, 16, %s540_s27, %s3074_s15  }
  0x74   : > { %s573_s14 = sshll.u32 %s566_s20, 4  ;;  %s574_s14 = int_to_ptr.vmem [resolvable:$true] %s573_s14 }
  0x78   : > { %s2603_s2 = scalar_lea.hbm %s3075_s8, %s2497_s19  ;;  %s2089_s27 = scalar_lea.hbm %s3075_s8, 32 }
  0x79   : > { %s2084_s12 = scalar_lea.hbm %s2603_s2, 16  ;;  %p2090_p9 = scmp.lt.u32.totalorder %s2603_s2, %s3075_s8 }
  0x7a   : > { %p2085_p2 = scmp.ne.s32.totalorder %s2603_s2, %s2084_s12  ;;  %p2091_p11 = scmp.lt.u32.totalorder %s2089_s27, %s2084_s12 }
  0x7b   : > { %p2093_p10 = scmp.lt.u32.totalorder %s2084_s12, %s2603_s2 }
  0x7c   : > { %p2087_p3 = pnand %p2085_p2, %p2520_p8  ;;  %p2092_p12 = por %p2091_p11, %p2090_p9 }
  0x7e   : > { %p2088_p7 = pneg %p2087_p3  ;;  %p2094_p13 = por %p2093_p10, %p2092_p12 }
  0x80   : > { %p2095_p1 = pnand %p2094_p13, %p2088_p7 }
  0x82   : > { %2098 = shalt.err (!%p2095_p1)
}
  0x83   : > { %s2099_s24 = scalar_lea.vmem %s574_s14, 16  ;;  %s2363_s20 = smov [#allocation14]  }
  0x84   : > { %p2100_p6 = scmp.ne.s32.totalorder %s574_s14, %s2099_s24  ;;  %s2104_s23 = sshll.u32 %s2363_s20, 4  ;;  %s2105_s23 = int_to_ptr.vmem [resolvable:$false] %s2104_s23 }
  0x85   : > { %s2106_s10 = scalar_lea.vmem %s2105_s23, 32  ;;  %p2107_p2 = scmp.lt.s32.totalorder %s574_s14, %s2105_s23 }
  0x86   : > { %p2102_p0 = pnand %p2100_p6, %p2520_p8  ;;  %p2108_p3 = scmp.lt.s32.totalorder %s2106_s10, %s2099_s24 }
  0x88   : > { %p2103_p4 = pneg %p2102_p0  ;;  %p2109_p5 = por %p2108_p3, %p2107_p2 }
  0x8a   : > { %p2110_p9 = pnand %p2109_p5, %p2103_p4 }
  0x8c   : > { %2113 = shalt.err (!%p2110_p9)
}
  0x8d   : > { %p3076_p11 = scmp.ne.s32.totalorder %s3066_s16, 0  ;;  %s3077_s12 = scalar_lea.sflag [#allocation15], %s2491_s17 }
  0x8e   : > { %s2627_s13 = sadd.s32 4294967295, %s2358_s30   ;;  %p121_p5 = scmp.ne.s32.totalorder %s2342_s26, %s2338_s25 }
  0x8f   : > { %1893 = dma.hbm_to_vmem [thread:$0]  (!%p3076_p11), %s2603_s2, 16, %s574_s14, %s3077_s12  }
  0x90   : > { %p3045_p7 = scmp.eq.s32.totalorder %s2627_s13, 0  ;;  %p1703_p12 = scmp.ge.s32.totalorder %s2358_s30, 1 }
  0x91   : > { %p418_p10 = scmp.lt.s32.totalorder %s2358_s30, 3  ;;  %s2364_s2 = smov [#allocation2]  }
  0x92   : > { %p2636_p13 = por %p3045_p7, %p121_p5  ;;  %s433_s14 = sshll.u32 %s2364_s2, 4  ;;  %s2646_s14 = int_to_ptr.vmem [resolvable:$true] %s433_s14 }
  0x93   : > { %p2640_p1 = pnand %p1703_p12, %p418_p10  ;;  %s2649_s25 = sshll.u32 %s2494_s18, 4 }
  0x94   : > { %s3078_s23 = scalar_select %p2636_p13, 1, 0 }
  0x95   : > { %s3079_s27 = scalar_select %p2640_p1, 1, 0 }
  0x96   : > { %p1868_p6 = pneg %p2640_p1  ;;  %s2658_s22 = sshll.u32 %s2354_s29, 8 }
  0x97   : > { %s474_s24 = scalar_lea.vmem [#allocation7], %s2649_s25  ;;  %s2665_s2 = scalar_lea.hbm %s3027_s3, %s2658_s22 }
  0x98   : > { %p2653_p0 = pnand %p1868_p6, %p3045_p7  ;;  %s481_s20 = sshll.u32 %s474_s24, 4  ;;  %s2688_s20 = int_to_ptr.vmem [resolvable:$true] %s481_s20 }
  0x99   : > { %s2114_s8 = scalar_lea.hbm %s3024_s0, 256 }
  0x9a   : > { %p2115_p4 = scmp.ne.s32.totalorder %s3024_s0, %s2114_s8  ;;  %p2116_p2 = pneg %p2653_p0 }
  0x9b   : > { %p2121_p5 = scmp.lt.u32.totalorder %s2114_s8, %s3024_s0 }
  0x9c   : > { %p2117_p3 = pnand %p2116_p2, %p2115_p4 }
  0x9e   : > { %p2118_p9 = pneg %p2117_p3 }
  0xa0   : > { %p2123_p12 = pnand %p2121_p5, %p2118_p9 }
  0xa2   : > { %2126 = shalt.err (!%p2123_p12)
}
  0xa3   : > { %s2127_s24 = scalar_lea.vmem %s2646_s14, 256  ;;  %p2135_p13 = scmp.lt.s32.totalorder %s2646_s14, %s2646_s14 }
  0xa4   : > { %p2128_p10 = scmp.ne.s32.totalorder %s2646_s14, %s2127_s24  ;;  %p2136_p1 = scmp.lt.s32.totalorder %s2127_s24, %s2127_s24 }
  0xa6   : > { %p2130_p6 = pnand %p2128_p10, %p2116_p2  ;;  %p2137_p11 = por %p2136_p1, %p2135_p13 }
  0xa8   : > { %p2131_p7 = pneg %p2130_p6 }
  0xaa   : > { %p2138_p8 = pnand %p2137_p11, %p2131_p7 }
  0xac   : > { %2141 = shalt.err (!%p2138_p8)
}
  0xad   : > { %s2365_s4 = smov 128   ;;  %s2366_s1 = smov 8  }
  0xae   : > { %1871 = dma.hbm_to_vmem [thread:$0]  (!%p2653_p0), %s3024_s0, 256, %s2646_s14, [#allocation3], %s2365_s4, %s2365_s4, %s2366_s1  }
  0xaf   : > { %s2142_s9 = scalar_lea.hbm %s2665_s2, 256  ;;  %p3081_p11 = scmp.ne.s32.totalorder %s3067_s21, 0 }
  0xb0   : > { %p2143_p13 = scmp.ne.s32.totalorder %s2665_s2, %s2142_s9  ;;  %s2147_s10 = scalar_lea.hbm %s3027_s3, 512 }
  0xb1   : > { %p2148_p1 = scmp.lt.u32.totalorder %s2665_s2, %s3027_s3  ;;  %p2149_p4 = scmp.lt.u32.totalorder %s2147_s10, %s2142_s9 }
  0xb2   : > { %p2145_p8 = pnand %p2143_p13, %p3081_p11  ;;  %p2151_p3 = scmp.lt.u32.totalorder %s2142_s9, %s2665_s2 }
  0xb3   : > { %p2150_p2 = por %p2149_p4, %p2148_p1 }
  0xb4   : > { %p2146_p7 = pneg %p2145_p8 }
  0xb5   : > { %p2152_p9 = por %p2151_p3, %p2150_p2 }
  0xb7   : > { %p2153_p0 = pnand %p2152_p9, %p2146_p7 }
  0xb9   : > { %2156 = shalt.err (!%p2153_p0)
}
  0xba   : > { %s2157_s14 = scalar_lea.vmem %s2688_s20, 256  ;;  %s2367_s15 = smov [#allocation7]  }
  0xbb   : > { %p2158_p5 = scmp.ne.s32.totalorder %s2688_s20, %s2157_s14  ;;  %s2162_s4 = sshll.u32 %s2367_s15, 4  ;;  %s2163_s4 = int_to_ptr.vmem [resolvable:$false] %s2162_s4 }
  0xbc   : > { %s2164_s1 = scalar_lea.vmem %s2163_s4, 512  ;;  %p2165_p6 = scmp.lt.s32.totalorder %s2688_s20, %s2163_s4 }
  0xbd   : > { %p2160_p12 = pnand %p2158_p5, %p3081_p11  ;;  %p2166_p13 = scmp.lt.s32.totalorder %s2164_s1, %s2157_s14 }
  0xbf   : > { %p2161_p10 = pneg %p2160_p12  ;;  %p2167_p8 = por %p2166_p13, %p2165_p6 }
  0xc1   : > { %p2168_p1 = pnand %p2167_p8, %p2161_p10 }
  0xc3   : > { %2171 = shalt.err (!%p2168_p1)
}
  0xc4   : > { %s2368_s6 = smov 64   ;;  %s2369_s8 = smov 4  }
  0xc5   : > { %p3082_p7 = scmp.ne.s32.totalorder %s3066_s16, 0  ;;  %s3083_s9 = scalar_lea.sflag [#allocation6], %s2491_s17 }
  0xc6   : > { %s2720_s10 = scalar_lea.hbm %s3029_s5, %s2658_s22  ;;  %s512_s12 = scalar_lea.vmem [#allocation10], %s2649_s25 }
  0xc7   : > { %1878 = dma.hbm_to_vmem [thread:$0]  (!%p3082_p7), %s2665_s2, 256, %s2688_s20, %s3083_s9, %s2368_s6, %s2368_s6, %s2369_s8  }
  0xc8   : > { %s519_s24 = sshll.u32 %s512_s12, 4  ;;  %s2172_s14 = scalar_lea.hbm %s2720_s10, 256  ;;  %s2723_s24 = int_to_ptr.vmem [resolvable:$true] %s519_s24 }
  0xc9   : > { %p2173_p4 = scmp.ne.s32.totalorder %s2720_s10, %s2172_s14  ;;  %s2177_s2 = scalar_lea.hbm %s3029_s5, 512 }
  0xca   : > { %p2178_p9 = scmp.lt.u32.totalorder %s2720_s10, %s3029_s5  ;;  %p2179_p0 = scmp.lt.u32.totalorder %s2177_s2, %s2172_s14 }
  0xcb   : > { %p2175_p2 = pnand %p2173_p4, %p3081_p11  ;;  %p2181_p12 = scmp.lt.u32.totalorder %s2172_s14, %s2720_s10 }
  0xcc   : > { %p2180_p5 = por %p2179_p0, %p2178_p9 }
  0xcd   : > { %p2176_p3 = pneg %p2175_p2 }
  0xce   : > { %p2182_p10 = por %p2181_p12, %p2180_p5 }
  0xd0   : > { %p2183_p6 = pnand %p2182_p10, %p2176_p3 }
  0xd2   : > { %2186 = shalt.err (!%p2183_p6)
}
  0xd3   : > { %s2187_s9 = scalar_lea.vmem %s2723_s24, 256  ;;  %s2370_s29 = smov [#allocation10]  }
  0xd4   : > { %p2188_p13 = scmp.ne.s32.totalorder %s2723_s24, %s2187_s9  ;;  %s2192_s30 = sshll.u32 %s2370_s29, 4  ;;  %s2193_s30 = int_to_ptr.vmem [resolvable:$false] %s2192_s30 }
  0xd5   : > { %s2194_s12 = scalar_lea.vmem %s2193_s30, 512  ;;  %p2195_p4 = scmp.lt.s32.totalorder %s2723_s24, %s2193_s30 }
  0xd6   : > { %p2190_p8 = pnand %p2188_p13, %p3081_p11  ;;  %p2196_p2 = scmp.lt.s32.totalorder %s2194_s12, %s2187_s9 }
  0xd8   : > { %p2191_p1 = pneg %p2190_p8  ;;  %p2197_p9 = por %p2196_p2, %p2195_p4 }
  0xda   : > { %p2198_p0 = pnand %p2197_p9, %p2191_p1 }
  0xdc   : > { %2201 = shalt.err (!%p2198_p0)
}
  0xdd   : > { %s3084_s14 = scalar_lea.sflag [#allocation9], %s2491_s17  ;;  %s2755_s2 = scalar_lea.hbm %s3031_s7, %s2497_s19 }
  0xde   : > { %1884 = dma.hbm_to_vmem [thread:$0]  (!%p3082_p7), %s2720_s10, 256, %s2723_s24, %s3084_s14, %s2368_s6, %s2368_s6, %s2369_s8  }
  0xdf   : > { %s549_s4 = scalar_lea.vmem [#allocation13], %s2494_s18  ;;  %s2202_s9 = scalar_lea.hbm %s2755_s2, 16 }
  0xe0   : > { %s556_s1 = sshll.u32 %s549_s4, 4  ;;  %p2203_p3 = scmp.ne.s32.totalorder %s2755_s2, %s2202_s9  ;;  %s557_s1 = int_to_ptr.vmem [resolvable:$true] %s556_s1 }
  0xe1   : > { %s2207_s10 = scalar_lea.hbm %s3031_s7, 32  ;;  %p2208_p10 = scmp.lt.u32.totalorder %s2755_s2, %s3031_s7 }
  0xe2   : > { %p2205_p5 = pnand %p2203_p3, %p3081_p11  ;;  %p2209_p6 = scmp.lt.u32.totalorder %s2207_s10, %s2202_s9 }
  0xe3   : > { %p2211_p8 = scmp.lt.u32.totalorder %s2202_s9, %s2755_s2 }
  0xe4   : > { %p2206_p12 = pneg %p2205_p5  ;;  %p2210_p13 = por %p2209_p6, %p2208_p10 }
  0xe6   : > { %p2212_p1 = por %p2211_p8, %p2210_p13 }
  0xe8   : > { %p2213_p4 = pnand %p2212_p1, %p2206_p12 }
  0xea   : > { %2216 = shalt.err (!%p2213_p4)
}
  0xeb   : > { %s2217_s18 = scalar_lea.vmem %s557_s1, 16  ;;  %s2371_s19 = smov [#allocation13]  }
  0xec   : > { %p2218_p2 = scmp.ne.s32.totalorder %s557_s1, %s2217_s18  ;;  %s2222_s14 = sshll.u32 %s2371_s19, 4  ;;  %s2223_s14 = int_to_ptr.vmem [resolvable:$false] %s2222_s14 }
  0xed   : > { %s2224_s15 = scalar_lea.vmem %s2223_s14, 32  ;;  %p2225_p3 = scmp.lt.s32.totalorder %s557_s1, %s2223_s14 }
  0xee   : > { %p2220_p9 = pnand %p2218_p2, %p3081_p11  ;;  %p2226_p5 = scmp.lt.s32.totalorder %s2224_s15, %s2217_s18 }
  0xf0   : > { %p2221_p0 = pneg %p2220_p9  ;;  %p2227_p7 = por %p2226_p5, %p2225_p3 }
  0xf2   : > { %p2228_p6 = pnand %p2227_p7, %p2221_p0 }
  0xf4   : > { %2231 = shalt.err (!%p2228_p6)
}
  0xf5   : > { %p3085_p10 = scmp.ne.s32.totalorder %s3066_s16, 0  ;;  %s3086_s20 = scalar_lea.sflag [#allocation12], %s2491_s17 }
  0xf6   : > { %s2781_s29 = scalar_lea.hbm %s3035_s11, %s2658_s22  ;;  %s598_s30 = scalar_lea.vmem [#allocation16], %s2649_s25 }
  0xf7   : > { %1890 = dma.hbm_to_vmem [thread:$0]  (!%p3085_p10), %s2755_s2, 16, %s557_s1, %s3086_s20  }
  0xf8   : > { %s605_s10 = sshll.u32 %s598_s30, 4  ;;  %s2232_s24 = scalar_lea.hbm %s2781_s29, 256  ;;  %s2784_s10 = int_to_ptr.vmem [resolvable:$true] %s605_s10 }
  0xf9   : > { %p2233_p7 = scmp.ne.s32.totalorder %s2781_s29, %s2232_s24  ;;  %s2237_s1 = scalar_lea.hbm %s3035_s11, 512 }
  0xfa   : > { %p2238_p8 = scmp.lt.u32.totalorder %s2781_s29, %s3035_s11  ;;  %p2239_p1 = scmp.lt.u32.totalorder %s2237_s1, %s2232_s24 }
  0xfb   : > { %p2235_p12 = pnand %p2233_p7, %p3081_p11  ;;  %p2241_p2 = scmp.lt.u32.totalorder %s2232_s24, %s2781_s29 }
  0xfc   : > { %p2240_p4 = por %p2239_p1, %p2238_p8 }
  0xfd   : > { %p2236_p13 = pneg %p2235_p12 }
  0xfe   : > { %p2242_p9 = por %p2241_p2, %p2240_p4 }
 0x100   : > { %p2243_p0 = pnand %p2242_p9, %p2236_p13 }
 0x102   : > { %2246 = shalt.err (!%p2243_p0)
}
 0x103   : > { %s2247_s25 = scalar_lea.vmem %s2784_s10, 256  ;;  %s2372_s19 = smov [#allocation16]  }
 0x104   : > { %p2248_p3 = scmp.ne.s32.totalorder %s2784_s10, %s2247_s25  ;;  %s2252_s14 = sshll.u32 %s2372_s19, 4  ;;  %s2253_s14 = int_to_ptr.vmem [resolvable:$false] %s2252_s14 }
 0x105   : > { %s2254_s15 = scalar_lea.vmem %s2253_s14, 512  ;;  %p2255_p7 = scmp.lt.s32.totalorder %s2784_s10, %s2253_s14 }
 0x106   : > { %p2250_p5 = pnand %p2248_p3, %p3081_p11  ;;  %p2256_p12 = scmp.lt.s32.totalorder %s2254_s15, %s2247_s25 }
 0x108   : > { %p2251_p6 = pneg %p2250_p5  ;;  %p2257_p8 = por %p2256_p12, %p2255_p7 }
 0x10a   : > { %p2258_p1 = pnand %p2257_p8, %p2251_p6 }
 0x10c   : > { %2261 = shalt.err (!%p2258_p1)
}
 0x10d   : > { %s3087_s20 = scalar_lea.sflag [#allocation15], %s2491_s17  ;;  %p3088_p11 = scmp.ne.s32.totalorder %s3079_s27, 0 }
 0x10e   : > { %1896 = dma.hbm_to_vmem [thread:$0]  (!%p3085_p10), %s2781_s29, 256, %s2784_s10, %s3087_s20, %s2368_s6, %s2368_s6, %s2369_s8  }
 0x10f   : > { %623 = sbr.rel (%p3088_p11) target bundleno = 2576 (0xa10), region = 72  ;;  %p3089_p13 = scmp.eq.s32.totalorder (!%p3088_p11), %s2627_s13, 0 }
 0x116   : > { %2313 = dma.done.wait (%p3089_p13), [#allocation3], 256   ;;  %p3090_p4 = pmov %p3089_p13 }
 0x117   : > { %s629_s16 = sand.u32 1, %s2627_s13   ;;  %s2820_s21 = sand.u32 1, %s2342_s26  }
 0x118   : > { %2315 = vsyncadd (%p3090_p4), [#allocation3], 4294967040  ;;  %s630_s17 = scalar_lea.sflag [#allocation6], %s629_s16  ;;  %s632_s4 = scalar_lea.vmem [#allocation5], %s2820_s21 }
 0x119   : > { %p3091_p2 = scmp.ne.s32.totalorder %s3078_s23, 0 }
 0x11b   : > { %2317 = dma.done.wait (%p3091_p2), %s630_s17, 272  }
 0x11c   : > { %2319 = vsyncadd (%p3091_p2), %s630_s17, 4294967024  ;;  %s2828_s27 = sshll.u32 %s2820_s21, 4  ;;  %s647_s8 = scalar_lea.sflag [#allocation9], %s629_s16 }
 0x11d   : > { %s641_s6 = scalar_lea.vmem [#allocation7], %s2828_s27 }
 0x11e   : > { %2321 = dma.done.wait (%p3091_p2), %s647_s8, 272  }
 0x11f   : > { %2323 = vsyncadd (%p3091_p2), %s647_s8, 4294967024  ;;  %s664_s30 = scalar_lea.sflag [#allocation12], %s629_s16 }
 0x120   : > { %2325 = dma.done.wait (%p3091_p2), %s664_s30, 32  }
 0x121   : > { %2327 = vsyncadd (%p3091_p2), %s664_s30, 4294967264  ;;  %s680_s12 = scalar_lea.sflag [#allocation15], %s629_s16 }
 0x122   : > { %2329 = dma.done.wait (%p3091_p2), %s680_s12, 272  }
 0x123   : > { %2331 = vsyncadd (%p3091_p2), %s680_s12, 4294967024  ;;  %p774_p10 = scmp.lt.s32.totalorder %s2350_s28, 1  ;;  %s3092_s25 = sld [smem:[#allocation29_spill]] }
 0x124   : > { %s3093_s16 = sld [smem:[#allocation34_spill]]  ;;  %s3094_s30 = sld [smem:[#allocation35_spill]] }
 0x125   : > { %s2850_s1 = scalar_select %p774_p10, %s2350_s28, 1 }
 0x126   : > { %s3095_s10 = sld [smem:[#allocation36_spill]]  ;;  %s691_s9 = scalar_lea.vmem [#allocation16], %s2828_s27 }
 0x127   : > { %s1763_s14 = sshll.u32 %s2850_s1, 4  ;;  %p1727_p9 = scmp.ne.s32.totalorder %s2350_s28, 0 }
 0x128   : > { %v794_v0 = vld [vmem:[#allocation2] sm:$0xff] (!%p1727_p9)  ;;  %vm796_vm0 = vcmask (!%p1727_p9), 261120   ;;  %v795_v1 = vld [vmem:[#allocation2 + $0x8] sm:$0xff] (!%p1727_p9) }
 0x129   : > { %s776_s19 = scalar_lea.vmem %s3092_s25, %s2850_s1  ;;  %793 = sbr.rel (%p1727_p9) target bundleno = 304 (0x130), region = 112  ;;  %797 = vst.msk [vmem:[#allocation17] sm:$0xff] (!%p1727_p9), %vm796_vm0, %v794_v0  ;;  %798 = vst.msk [vmem:[#allocation17 + $0x8] sm:$0xff] (!%p1727_p9), %vm796_vm0, %v795_v1 }
 0x12a   : > { %s2860_s23 = scalar_lea.vmem %s3093_s16, %s1763_s14  ;;  %s784_s12 = scalar_lea.vmem %s3094_s30, %s2850_s1 }
 0x12c   : > { %s787_s29 = scalar_lea.vmem %s3095_s10, %s2850_s1 }
 0x130 PF: > { %v2872_v2 = vld [vmem:[#allocation17] sm:$0xff]  ;;  %vm803_vm1 = vcmask 261120   ;;  %v2874_v3 = vld [vmem:[#allocation17 + $0x8] sm:$0xff]  ;;  %v2373_v17 = vmov 0.0   ;;  %vm2374_vm2 = vmmov 0   ;;  %s3097_s24 = scalar_lea.vmem [#allocation8], %s2820_s21  ;;  %v927_v53 = vlaneseq }
 0x131   : > { %v804_v4 = vsel %vm803_vm1, %v2872_v2, 0.0  ;;  %v807_v5 = vsel %vm803_vm1, %v2874_v3, 0.0  ;;  %v1962_v16 = vld [vmem:[%s641_s6] sm:$0xff]   ;;  %1788 = vmatprep.subr.bf16.mxu0 %v2373_v17  ;;  %1796 = vmatprep.subr.bf16.mxu1 %v2373_v17  ;;  %v1963_v18 = vld [vmem:[%s641_s6 + $0x8] sm:$0xff]   ;;  %vm1034_vm4 = vcmask 64512   ;;  %s2376_s2 = smov 64  }
 0x132   : > { %805 = vadd.xlane.f32.xlu0 %v804_v4  ;;  %1789 = vmatpush3.bf16.msra.mxu0 %v1962_v16  ;;  %v1728_v27 = vld [vmem:[%s776_s19] ss:$0 sm:$0xff]  ;;  %v928_v54 = vshrl.u32 %v927_v53, 7  ;;  %v930_v55 = vand.u32 127, %v927_v53  ;;  %vm1072_vm5 = vcmask 1043456   ;;  %s3098_s18 = scalar_lea.vmem [#allocation10], %s2828_s27 }
 0x133   : > { %1792 = vmatprep.mubr.msk.bf16.mxu0 %vm2374_vm2, %v2373_v17  ;;  %1790 = vmatprep.subr.bf16.mxu0 %v2373_v17  ;;  %v1729_v31 = vld [vmem:[%s632_s4] ss:$0 sm:$0xff]  ;;  %s2375_s4 = smov 96   ;;  %s3099_s22 = smov %s3098_s18 }
 0x134   : > { %1798 = vmatprep.mubr.msk.bf16.mxu1 %vm2374_vm2, %v2373_v17  ;;  %v1730_v36 = vld [vmem:[%s3097_s24] ss:$0 sm:$0xff]  ;;  %vm931_vm3 = vcmp.le.s32.totalorder %v930_v55, %v928_v54  ;;  %s3100_s25 = scalar_lea.vmem [#allocation11], %s2820_s21  ;;  %s3101_s19 = scalar_lea.vmem [#allocation13], %s2820_s21 }
 0x135   : > { %v1742_v54 = vld [vmem:[%s3100_s25] ss:$0 sm:$0xff]  ;;  %s3102_s14 = scalar_lea.vmem [#allocation14], %s2820_s21  ;;  %p1900_p0 = scmp.eq.s32.totalorder %s2627_s13, 1 }
 0x136   : > { %808 = vadd.xlane.f32.xlu0 %v807_v5  ;;  %1791 = vmatpush3.bf16.msra.mxu0 %v1963_v18 }
 0x137   : > { %1802 = vmatprep.subr.bf16.mxu0 %v2373_v17 }
 0x1bf   : > { %v806_v6 = vpop.xlane.xlu0 %805 }
 0x1c0   : > { %v811_v7 = vmul.f32 0.03125, %v806_v6 }
 0x1c2   : > { %v813_v8 = vsub.f32 %v2872_v2, %v811_v7 }
 0x1c3   : > { %v809_v9 = vpop.xlane.xlu0 %808 }
 0x1c4   : > { %v812_v10 = vmul.f32 0.03125, %v809_v9  ;;  %v815_v11 = vmul.f32 %v813_v8, %v813_v8 }
 0x1c6   : > { %v814_v12 = vsub.f32 %v2874_v3, %v812_v10  ;;  %v817_v13 = vsel %vm803_vm1, %v815_v11, 0.0 }
 0x1c7   : > { %818 = vadd.xlane.f32.xlu1 %v817_v13 }
 0x1c8   : > { %v816_v14 = vmul.f32 %v814_v12, %v814_v12 }
 0x1ca   : > { %v820_v15 = vsel %vm803_vm1, %v816_v14, 0.0 }
 0x1cb   : > { %821 = vadd.xlane.f32.xlu1 %v820_v15 }
 0x254   : > { %v819_v19 = vpop.xlane.xlu1 %818 }
 0x255   : > { %v823_v20 = vmul.f32 0.03125, %v819_v19 }
 0x257   : > { %v825_v21 = vadd.f32 1e-05, %v823_v20 }
 0x258   : > { %v822_v22 = vpop.xlane.xlu1 %821 }
 0x259   : > { %1970 = vrsqrt.f32 %v825_v21  ;;  %v824_v23 = vmul.f32 0.03125, %v822_v22 }
 0x25b   : > { %v826_v24 = vadd.f32 1e-05, %v824_v23 }
 0x25d   : > { %1972 = vrsqrt.f32 %v826_v24 }
 0x263   : > { %v1971_v25 = vpop.eup %1970 }
 0x264   : > { %v829_v26 = vmul.f32 %v1971_v25, %v813_v8  ;;  %v1964_v25 = vld [vmem:[%s3098_s18] sm:$0xff]  }
 0x266   : > { %v837_v30 = vmul.f32 %v1728_v27, %v829_v26  ;;  %v1965_v26 = vld [vmem:[%s3099_s22 + $0x8] sm:$0xff]  }
 0x267   : > { %v1973_v28 = vpop.eup %1972 }
 0x268   : > { %v830_v29 = vmul.f32 %v1973_v28, %v814_v12  ;;  %v845_v33 = vadd.f32 %v1729_v31, %v837_v30 }
 0x26a   : > { %v838_v32 = vmul.f32 %v1728_v27, %v830_v29 }
 0x26c   : > { %v846_v34 = vadd.f32 %v1729_v31, %v838_v32 }
 0x26e   : > { %v847_v35 = vpack.c.bf16 %v846_v34, %v845_v33 }
 0x270   : > { %1793 = vmatmul.mubr.msk.bf16.vlgmr.msra.gmra.mrb[0].mxu0 %vm803_vm1, %v847_v35 }
 0x271   : > { %1804 = vmatprep.mubr.msk.bf16.mxu0 %vm2374_vm2, %v2373_v17 }
 0x343   : > { %v908_v37 = vpop.f32.mrb[0].mxu0 }
 0x344   : > { %v909_v38 = vadd.f32 %v1730_v36, %v908_v37  ;;  %v1794_v39 = vpop.f32.mrb[1].mxu0 }
 0x345   : > { %v911_v40 = vpop.f32.mrb[2].mxu0 }
 0x346   : > { %v1766_v41 = vpack.c.bf16 %v909_v38, %v909_v38  ;;  %v912_v42 = vadd.f32 %v1730_v36, %v911_v40  ;;  %v1795_v43 = vpop.f32.mrb[3].mxu0  ;;  %v915_v48 = vmul.f32 0.17677669, %v909_v38 }
 0x348   : > { %v1767_v44 = vpack.c.bf16 %v912_v42, %v912_v42  ;;  %933 = vrot.lane.b32.xlu0 %v1766_v41, %s2375_s4  ;;  %v916_v50 = vmul.f32 0.17677669, %v912_v42  ;;  %v1764_v51 = vpack.c.bf16 %v915_v48, %v915_v48 }
 0x34a   : > { %982 = vrot.lane.b32.xlu1 %v1767_v44, %s2375_s4  ;;  %v1765_v52 = vpack.c.bf16 %v916_v50, %v916_v50 }
 0x3ba   : > { %v934_v45 = vpop.permute.xlu0 %933 }
 0x3bb   : > { %v939_v46 = vsel %vm803_vm1, %v934_v45, 0 }
 0x3bc   : > { %1797 = vmatpush3.bf16.xpose.msra.mxu1 %v939_v46  ;;  %v983_v47 = vpop.permute.xlu1 %982 }
 0x3bd   : > { %v988_v49 = vsel %vm803_vm1, %v983_v47, 0  ;;  %1808 = vmatprep.subr.bf16.mxu1 %v2373_v17 }
 0x3be   : > { %1803 = vmatpush3.bf16.xpose.msra.mxu0 %v988_v49 }
 0x3bf   : > { %1814 = vmatprep.subr.bf16.mxu0 %v2373_v17 }
 0x3c3   : > { %1799 = vmatmul.mubr.msk.bf16.vlgmr.msra.gmra.mrb[0].mxu1 %vm803_vm1, %v1764_v51 }
 0x3c4   : > { %1810 = vmatprep.mubr.msk.bf16.mxu1 %vm2374_vm2, %v2373_v17 }
 0x3c5   : > { %1805 = vmatmul.mubr.msk.bf16.vlgmr.msra.gmra.mrb[4].mxu0 %vm803_vm1, %v1765_v52 }
 0x3c6   : > { %1816 = vmatprep.mubr.msk.bf16.mxu0 %vm2374_vm2, %v2373_v17 }
 0x496   : > { %v975_v56 = vpop.f32.mrb[0].mxu1 }
 0x497   : > { %v1032_v57 = vsel %vm931_vm3, %v975_v56, -1e+30  ;;  %v1800_v58 = vpop.f32.mrb[1].mxu1 }
 0x498   : > { %v978_v59 = vpop.f32.mrb[2].mxu1  ;;  %v1024_v60 = vpop.f32.mrb[4].mxu0  ;;  %v1035_v61 = vsel %vm1034_vm4, %v1032_v57, -inf }
 0x499   : > { %v1033_v62 = vsel %vm931_vm3, %v1024_v60, -1e+30  ;;  %v1801_v63 = vpop.f32.mrb[3].mxu1  ;;  %1036 = vmax.xlane.f32.xlu1 %v1035_v61  ;;  %v1806_v0 = vpop.f32.mrb[5].mxu0 }
 0x49a   : > { %v1027_v1 = vpop.f32.mrb[6].mxu0  ;;  %v1038_v4 = vsel %vm1034_vm4, %v1033_v62, -inf }
 0x49b   : > { %1039 = vmax.xlane.f32.xlu0 %v1038_v4  ;;  %v1807_v5 = vpop.f32.mrb[7].mxu0 }
 0x4aa   : > { %1116 = vrot.lane.b32.xlu1 %v1767_v44, %s2376_s2 }
 0x4b1   : > { %1067 = vrot.lane.b32.xlu0 %v1766_v41, %s2376_s2 }
 0x526   : > { %v1037_v6 = vpop.xlane.xlu1 %1036 }
 0x527   : > { %v1041_v7 = vmax.f32 %v1037_v6, -1e+30 }
 0x528   : > { %v1040_v8 = vpop.xlane.xlu0 %1039 }
 0x529   : > { %v1049_v9 = vsub.f32 %v1032_v57, %v1041_v7  ;;  %v1042_v10 = vmax.f32 %v1040_v8, -1e+30  ;;  %v1043_v27 = vsub.f32 -1e+30, %v1041_v7 }
 0x52a   : > { %v1117_v11 = vpop.permute.xlu1 %1116 }
 0x52b   : > { %v1051_v12 = vmul.f32 1.442695, %v1049_v9  ;;  %v1050_v13 = vsub.f32 %v1033_v62, %v1042_v10  ;;  %v1122_v14 = vsel %vm1072_vm5, %v1117_v11, 0  ;;  %v1044_v28 = vsub.f32 -1e+30, %v1042_v10  ;;  %v1966_v11 = vld [vmem:[%s2860_s23] sm:$0xff]  }
 0x52c   : > { %v1068_v15 = vpop.permute.xlu0 %1067  ;;  %1815 = vmatpush3.bf16.msra.mxu0 %v1122_v14  ;;  %v1045_v29 = vmul.f32 1.442695, %v1043_v27 }
 0x52d   : > { %v1053_v16 = vmul.f32 1.442695, %v1050_v13  ;;  %v1074_v18 = vsel %vm1072_vm5, %v1068_v15, 0  ;;  %1974 = vpow2.f32 %v1051_v12  ;;  %1828 = vmatprep.subr.bf16.mxu0 %v2373_v17  ;;  %v1047_v30 = vmul.f32 1.442695, %v1044_v28  ;;  %v1967_v12 = vld [vmem:[%s2860_s23 + $0x8] sm:$0xff]  }
 0x52e   : > { %1809 = vmatpush3.bf16.msra.mxu1 %v1074_v18  ;;  %s2377_s23 = smov [#allocation17]  }
 0x52f   : > { %1820 = vmatprep.subr.bf16.mxu1 %v2373_v17  ;;  %1976 = vpow2.f32 %v1053_v16  ;;  %s1451_s17 = sshll.u32 %s2377_s23, 4  ;;  %s1452_s17 = int_to_ptr.vmem [resolvable:$true] %s1451_s17 }
 0x530   : > { %1978 = vpow2.f32 %v1045_v29  ;;  %p2269_p7 = scmp.lt.s32.totalorder %s1452_s17, %s1452_s17 }
 0x531   : > { %1980 = vpow2.f32 %v1047_v30 }
 0x537   : > { %v1975_v19 = vpop.eup %1974 }
 0x538   : > { %v1057_v20 = vsel %vm1034_vm4, %v1975_v19, 0.0  ;;  %v1065_v21 = vpack.c.bf16 %v1975_v19, %v1975_v19 }
 0x539   : > { %v1977_v22 = vpop.eup %1976  ;;  %1058 = vadd.xlane.f32.xlu1 %v1057_v20 }
 0x53a   : > { %1811 = vmatmul.mubr.msk.bf16.vlgmr.msra.gmra.mrb[4].mxu1 %vm1034_vm4, %v1065_v21  ;;  %v1060_v23 = vsel %vm1034_vm4, %v1977_v22, 0.0  ;;  %v1066_v24 = vpack.c.bf16 %v1977_v22, %v1977_v22  ;;  %v1979_v31 = vpop.eup %1978  ;;  %v1746_v21 = vld [vmem:[%s3101_s19] ss:$0 sm:$0xff] }
 0x53b   : > { %1061 = vadd.xlane.f32.xlu0 %v1060_v23  ;;  %1824 = vmatprep.mubr.msk.bf16.mxu1 %vm2374_vm2, %v2373_v17  ;;  %v1981_v32 = vpop.eup %1980  ;;  %v1055_v34 = vmul.f32 0.0, %v1979_v31  ;;  %v1968_v31 = vld [vmem:[%s691_s9] sm:$0xff]  }
 0x53c   : > { %1817 = vmatmul.mubr.msk.bf16.vlgmr.msra.gmra.mrb[8].mxu0 %vm1034_vm4, %v1066_v24  ;;  %1821 = vmatpush3.bf16.msra.mxu1 %v1964_v25  ;;  %v1056_v37 = vmul.f32 0.0, %v1981_v32  ;;  %v1969_v32 = vld [vmem:[%s691_s9 + $0x8] sm:$0xff]  }
 0x53d   : > { %1832 = vmatprep.mubr.msk.bf16.mxu0 %vm2374_vm2, %v2373_v17  ;;  %1822 = vmatprep.subr.bf16.mxu1 %v2373_v17 }
 0x53e   : > { %1829 = vmatpush3.bf16.msra.mxu0 %v1966_v11 }
 0x53f   : > { %1830 = vmatprep.subr.bf16.mxu0 %v2373_v17 }
 0x540   : > { %1823 = vmatpush3.bf16.msra.mxu1 %v1965_v26  ;;  %v1747_v26 = vld [vmem:[%s3102_s14] ss:$0 sm:$0xff] }
 0x541   : > { %1836 = vmatprep.subr.bf16.mxu1 %v2373_v17 }
 0x542   : > { %1831 = vmatpush3.bf16.msra.mxu0 %v1967_v12 }
 0x5c6   : > { %v1059_v33 = vpop.xlane.xlu1 %1058 }
 0x5c7   : > { %v1063_v36 = vadd.f32 %v1059_v33, %v1055_v34  ;;  %v1748_v33 = vld [vmem:[%s784_s12] ss:$0 sm:$0xff] }
 0x5c8   : > { %v1062_v35 = vpop.xlane.xlu0 %1061 }
 0x5c9   : > { %v1064_v38 = vadd.f32 %v1062_v35, %v1056_v37  ;;  %1982 = vrcp.f32 %v1063_v36 }
 0x5cb   : > { %1984 = vrcp.f32 %v1064_v38 }
 0x5d3   : > { %v1983_v42 = vpop.eup %1982 }
 0x5d5   : > { %v1985_v49 = vpop.eup %1984 }
 0x60d   : > { %v1110_v39 = vpop.f32.mrb[4].mxu1 }
 0x60e   : > { %v1164_v40 = vadd.f32 %v1110_v39, %v1055_v34  ;;  %v1812_v41 = vpop.f32.mrb[5].mxu1 }
 0x60f   : > { %v1113_v43 = vpop.f32.mrb[6].mxu1  ;;  %v1158_v44 = vpop.f32.mrb[8].mxu0 }
 0x610   : > { %v1168_v45 = vmul.f32 %v1983_v42, %v1164_v40  ;;  %v1165_v46 = vadd.f32 %v1158_v44, %v1056_v37  ;;  %v1813_v47 = vpop.f32.mrb[7].mxu1  ;;  %v1818_v48 = vpop.f32.mrb[9].mxu0 }
 0x611   : > { %v1161_v50 = vpop.f32.mrb[10].mxu0 }
 0x612   : > { %v1169_v51 = vmul.f32 %v1985_v49, %v1165_v46  ;;  %v1819_v52 = vpop.f32.mrb[11].mxu0 }
 0x614   : > { %v1170_v53 = vpack.c.bf16 %v1169_v51, %v1168_v45 }
 0x616   : > { %1825 = vmatmul.mubr.msk.bf16.vlgmr.msra.gmra.mrb[8].mxu1 %vm803_vm1, %v1170_v53 }
 0x617   : > { %1840 = vmatprep.mubr.msk.bf16.mxu1 %vm2374_vm2, %v2373_v17  ;;  %1837 = vmatpush3.bf16.msra.mxu1 %v1968_v31 }
 0x618   : > { %1838 = vmatprep.subr.bf16.mxu1 %v2373_v17 }
 0x61b   : > { %1839 = vmatpush3.bf16.msra.mxu1 %v1969_v32 }
 0x6e9   : > { %v1231_v55 = vpop.f32.mrb[8].mxu1 }
 0x6ea   : > { %v1232_v56 = vadd.f32 %v1742_v54, %v1231_v55  ;;  %v1826_v57 = vpop.f32.mrb[9].mxu1 }
 0x6eb   : > { %v1234_v58 = vpop.f32.mrb[10].mxu1 }
 0x6ec   : > { %v2942_v59 = vadd.f32 %v1232_v56, %v2872_v2  ;;  %v1235_v60 = vadd.f32 %v1742_v54, %v1234_v58  ;;  %v1827_v61 = vpop.f32.mrb[11].mxu1  ;;  %v1752_v58 = vld [vmem:[%s787_s29] ss:$0 sm:$0xff]  ;;  %s2262_s29 = scalar_lea.vmem %s1452_s17, 256 }
 0x6ed   : > { %p2263_p3 = scmp.ne.s32.totalorder %s1452_s17, %s2262_s29  ;;  %p2270_p12 = scmp.lt.s32.totalorder %s2262_s29, %s2262_s29 }
 0x6ee   : > { %v2945_v62 = vadd.f32 %v1235_v60, %v2874_v3  ;;  %v1242_v63 = vsel %vm803_vm1, %v2942_v59, 0.0 }
 0x6ef   : > { %1243 = vadd.xlane.f32.xlu0 %v1242_v63  ;;  %p2264_p5 = pnand %p2263_p3, %p1900_p0  ;;  %p2271_p8 = por %p2270_p12, %p2269_p7 }
 0x6f0   : > { %v1245_v0 = vsel %vm803_vm1, %v2945_v62, 0.0 }
 0x6f1   : > { %1246 = vadd.xlane.f32.xlu1 %v1245_v0  ;;  %p2265_p6 = pneg %p2264_p5 }
 0x6f3   : > { %p2272_p1 = pnand %p2271_p8, %p2265_p6 }
 0x77c   : > { %v1244_v1 = vpop.xlane.xlu0 %1243 }
 0x77d   : > { %v1248_v4 = vmul.f32 0.03125, %v1244_v1 }
 0x77e   : > { %v1247_v5 = vpop.xlane.xlu1 %1246 }
 0x77f   : > { %v1250_v2 = vsub.f32 %v2942_v59, %v1248_v4  ;;  %v1249_v6 = vmul.f32 0.03125, %v1247_v5 }
 0x781   : > { %v1251_v7 = vsub.f32 %v2945_v62, %v1249_v6  ;;  %v1252_v3 = vmul.f32 %v1250_v2, %v1250_v2 }
 0x783   : > { %v1254_v8 = vsel %vm803_vm1, %v1252_v3, 0.0  ;;  %v1253_v9 = vmul.f32 %v1251_v7, %v1251_v7 }
 0x784   : > { %1255 = vadd.xlane.f32.xlu0 %v1254_v8 }
 0x785   : > { %v1257_v10 = vsel %vm803_vm1, %v1253_v9, 0.0 }
 0x786   : > { %1258 = vadd.xlane.f32.xlu1 %v1257_v10 }
 0x811   : > { %v1256_v13 = vpop.xlane.xlu0 %1255 }
 0x812   : > { %v1260_v14 = vmul.f32 0.03125, %v1256_v13 }
 0x813   : > { %v1259_v15 = vpop.xlane.xlu1 %1258 }
 0x814   : > { %v1262_v16 = vadd.f32 1e-05, %v1260_v14  ;;  %v1261_v18 = vmul.f32 0.03125, %v1259_v15 }
 0x816   : > { %1986 = vrsqrt.f32 %v1262_v16  ;;  %v1263_v19 = vadd.f32 1e-05, %v1261_v18 }
 0x818   : > { %1988 = vrsqrt.f32 %v1263_v19 }
 0x820   : > { %v1987_v20 = vpop.eup %1986 }
 0x821   : > { %v1266_v22 = vmul.f32 %v1987_v20, %v1250_v2 }
 0x822   : > { %v1989_v23 = vpop.eup %1988 }
 0x823   : > { %v1274_v24 = vmul.f32 %v1746_v21, %v1266_v22  ;;  %v1267_v25 = vmul.f32 %v1989_v23, %v1251_v7 }
 0x825   : > { %v1275_v27 = vmul.f32 %v1746_v21, %v1267_v25  ;;  %v1282_v28 = vadd.f32 %v1747_v26, %v1274_v24 }
 0x827   : > { %v1283_v29 = vadd.f32 %v1747_v26, %v1275_v27 }
 0x829   : > { %v1284_v30 = vpack.c.bf16 %v1283_v29, %v1282_v28 }
 0x82b   : > { %1833 = vmatmul.mubr.msk.bf16.vlgmr.msra.gmra.mrb[12].mxu0 %vm803_vm1, %v1284_v30 }
 0x8fe   : > { %v1345_v34 = vpop.f32.mrb[12].mxu0 }
 0x8ff   : > { %v1346_v35 = vadd.f32 %v1748_v33, %v1345_v34  ;;  %v1834_v36 = vpop.f32.mrb[13].mxu0 }
 0x900   : > { %v1348_v37 = vpop.f32.mrb[14].mxu0 }
 0x901   : > { %v1352_v38 = vmul.f32 %v1346_v35, %v1346_v35  ;;  %v1349_v39 = vadd.f32 %v1748_v33, %v1348_v37  ;;  %v1835_v40 = vpop.f32.mrb[15].mxu0 }
 0x903   : > { %v1354_v41 = vmul.f32 %v1352_v38, %v1346_v35  ;;  %v1353_v42 = vmul.f32 %v1349_v39, %v1349_v39 }
 0x905   : > { %v1356_v43 = vmul.f32 0.044715, %v1354_v41  ;;  %v1355_v44 = vmul.f32 %v1353_v42, %v1349_v39 }
 0x907   : > { %v1358_v17 = vadd.f32 %v1356_v43, %v1346_v35  ;;  %v1357_v45 = vmul.f32 0.044715, %v1355_v44 }
 0x909   : > { %v1360_v46 = vmul.f32 0.7978846, %v1358_v17  ;;  %v1359_v47 = vadd.f32 %v1357_v45, %v1349_v39 }
 0x90b   : > { %1990 = vtanh.f32 %v1360_v46  ;;  %v1361_v48 = vmul.f32 0.7978846, %v1359_v47 }
 0x90d   : > { %1992 = vtanh.f32 %v1361_v48 }
 0x915   : > { %v1991_v49 = vpop.eup %1990 }
 0x916   : > { %v1364_v50 = vadd.f32 1.0, %v1991_v49 }
 0x917   : > { %v1993_v51 = vpop.eup %1992 }
 0x918   : > { %v1366_v52 = vmul.f32 0.5, %v1364_v50  ;;  %v1365_v53 = vadd.f32 1.0, %v1993_v51 }
 0x91a   : > { %v1367_v54 = vmul.f32 0.5, %v1365_v53  ;;  %v1368_v55 = vmul.f32 %v1366_v52, %v1346_v35 }
 0x91c   : > { %v1369_v56 = vmul.f32 %v1367_v54, %v1349_v39 }
 0x91e   : > { %v1370_v57 = vpack.c.bf16 %v1369_v56, %v1368_v55 }
 0x920   : > { %1841 = vmatmul.mubr.msk.bf16.vlgmr.msra.gmra.mrb[12].mxu1 %vm803_vm1, %v1370_v57 }
 0x9f3   : > { %v1431_v60 = vpop.f32.mrb[12].mxu1 }
 0x9f4   : > { %v1432_v61 = vadd.f32 %v1752_v58, %v1431_v60  ;;  %v1842_v63 = vpop.f32.mrb[13].mxu1 }
 0x9f5   : > { %v1434_v0 = vpop.f32.mrb[14].mxu1 }
 0x9f6   : > { %v1438_v1 = vadd.f32 %v1432_v61, %v2942_v59  ;;  %v1435_v4 = vadd.f32 %v1752_v58, %v1434_v0  ;;  %v1843_v5 = vpop.f32.mrb[15].mxu1 }
 0x9f8   : > { %1440 = vst.msk [vmem:[#allocation17] sm:$0xff] %vm803_vm1, %v1438_v1  ;;  %v1439_v2 = vadd.f32 %v1435_v4, %v2945_v62 }
 0x9fa   : > { %1441 = vst.msk [vmem:[#allocation17 + $0x8] sm:$0xff] %vm803_vm1, %v1439_v2 }
 0x9fb   : > { %2275 = shalt.err (!%p2272_p1)
}
 0x9fc   : > { %s3105_s30 = sld [smem:[#allocation37_spill]] }
 0xa02   : > { %s3106_s12 = smov %s3105_s30  ;;  %s2276_s28 = scalar_lea.hbm %s3105_s30, 256 }
 0xa03   : > { %p2277_p11 = scmp.ne.s32.totalorder %s3106_s12, %s2276_s28  ;;  %p2282_p2 = scmp.lt.u32.totalorder %s2276_s28, %s3106_s12 }
 0xa05   : > { %p2278_p13 = pnand %p2277_p11, %p1900_p0 }
 0xa07   : > { %p2279_p4 = pneg %p2278_p13 }
 0xa09   : > { %p2284_p10 = pnand %p2282_p2, %p2279_p4 }
 0xa0b   : > { %2287 = shalt.err (!%p2284_p10)
}
 0xa0c   : > { %s2378_s2 = smov 128   ;;  %s2379_s18 = smov 8  }
 0xa0d   : > { %1865 = dma.vmem_to_hbm [thread:$0]  (%p1900_p0), %s1452_s17, 256, %s3106_s12, [#allocation4], %s2378_s2, %s2378_s2, %s2379_s18  }
 0xa0e   : > { %2333 = dma.done.wait (%p1900_p0), [#allocation4], 256  }
 0xa0f   : > { %2335 = vsyncadd (%p1900_p0), [#allocation4], 4294967040 }
 0xa10 PF: > { %s3107_s19 = sld [smem:[#allocation26_spill]]  ;;  %s3108_s14 = sld [smem:[#allocation24_spill]] }
 0xa11   : > { %s3109_s27 = sld [smem:[#allocation28_spill]]  ;;  %s3110_s28 = sld [smem:[#allocation25_spill]] }
 0xa12   : > { %s3111_s29 = sld [smem:[#allocation27_spill]]  ;;  %s3112_s25 = smov %s2342_s26 }
 0xa16   : > { %s37_s30 = sadd.s32 1, %s3107_s19   ;;  %s3113_s26 = smov %s3108_s14 }
 0xa17   : > { %p34_p9 = scmp.ge.s32.totalorder %s37_s30, 4  }
 0xa19   :  { %36 = sbr.rel (!%p34_p9) target bundleno = 22 (0x16), region = 215 }
 0xa20   :  { %1467 = vsyncpa [#allocation3], 1 }
 0xa21   :  { %1469 = vsyncpa [#allocation3 + $0x1], 1 }
 0xa22   :  { %1470 = vsyncpa [#allocation6], 1 }
 0xa23   :  { %1472 = vsyncpa [#allocation6 + $0x1], 1 }
 0xa24   :  { %1473 = vsyncpa [#allocation9], 1 }
 0xa25   :  { %1475 = vsyncpa [#allocation9 + $0x1], 1 }
 0xa26   :  { %1476 = vsyncpa [#allocation12], 1 }
 0xa27   :  { %1478 = vsyncpa [#allocation12 + $0x1], 1 }
 0xa28   :  { %1479 = vsyncpa [#allocation15], 1 }
 0xa29   :  { %1481 = vsyncpa [#allocation15 + $0x1], 1 }
 0xa2a   :  { %1482 = vsyncpa [#allocation4], 1 }
 0xa2b   :  { %1484 = vsyncpa [#allocation4 + $0x1], 1 }

</bundles_post_ra>
